<compile_context>
chip_gen: v7x
topology: tpu7x:2x2x1
jax: 0.10.0
libtpu: 0.0.40
codegen_flags: <defaults>
</compile_context>

<pallas_src>
import jax
import jax.numpy as jnp
from jax.experimental import pallas as pl
from jax.experimental.pallas import tpu as pltpu


# ----------------------------------- kernel ----------------------------------
def _hard_search_kernel(cand_ref, beh_ref, mask_ref):
    """Exact-match retrieval over one batch tile.

    cand_ref: (TB, D)     candidate attribute keys
    beh_ref:  (TB, S, D)  user behavior attribute keys
    mask_ref: (TB, S)     int32 {0,1}; 1 where all D key components match
    """
    cand = cand_ref[...]                                   # (TB, D)
    beh = beh_ref[...]                                     # (TB, S, D)
    # Count mismatching key components along the (lane) key dim; a behavior
    # row is a hit iff the mismatch count is exactly zero.
    neq = (beh != cand[:, None, :]).astype(jnp.int32)      # (TB, S, D)
    mismatch = jnp.sum(neq, axis=-1)                       # (TB, S)
    mask_ref[...] = (mismatch == 0).astype(jnp.int32)


# ---------------------------------- wrapper -----------------------------------
def _pick_batch_tile(B, S, D, itemsize, vmem_budget_bytes=8 << 20):
    """Rows per grid step.  Sized against the double-buffered (TB, S, D) input
    tile (the dominant VMEM consumer) so it also fits v7x's 64 MiB VMEM; kept a
    multiple of 8 when possible so sublane tiles stay dense."""
    rows = max(1, vmem_budget_bytes // (2 * S * D * itemsize))
    if B <= 8:
        return B                       # block == full batch dim -> always legal
    tb = min(B, max(8, (rows // 8) * 8))
    return (tb // 8) * 8


def hard_search(candidate_key, user_behavior_keys):
    """candidate_key: (B, D), user_behavior_keys: (B, S, D) -> bool mask (B, S)."""
    B, S, D = user_behavior_keys.shape
    assert candidate_key.shape == (B, D)

    itemsize = jnp.dtype(user_behavior_keys.dtype).itemsize
    tb = _pick_batch_tile(B, S, D, itemsize)
    n_blocks = pl.cdiv(B, tb)
    b_pad = n_blocks * tb
    if b_pad != B:
        candidate_key = jnp.pad(candidate_key, ((0, b_pad - B), (0, 0)))
        user_behavior_keys = jnp.pad(
            user_behavior_keys, ((0, b_pad - B), (0, 0), (0, 0)))

    out_i32 = pl.pallas_call(
        _hard_search_kernel,
        out_shape=jax.ShapeDtypeStruct((b_pad, S), jnp.int32),
        grid_spec=pltpu.PrefetchScalarGridSpec(
            num_scalar_prefetch=0,
            grid=(n_blocks,),
            in_specs=[
                pl.BlockSpec((tb, D), lambda b: (b, 0)),
                pl.BlockSpec((tb, S, D), lambda b: (b, 0, 0)),
            ],
            out_specs=pl.BlockSpec((tb, S), lambda b: (b, 0)),
        ),
        compiler_params=pltpu.CompilerParams(
            dimension_semantics=("parallel",)),
    )(candidate_key, user_behavior_keys)

    # Kernel emits lane-dense int32 {0,1}; cast to bool outside (trivial op).
    return out_i32[:B].astype(jnp.bool_)


# ------------------------------ pure-JAX reference ----------------------------
def _ref_hard_search(candidate_key, user_behavior_keys):
    return jnp.all(user_behavior_keys == candidate_key[:, None, :], axis=-1)


if __name__ == "__main__":
    B, S, D = 4, 128, 8   # batch, seq_len, key_dim

    key = jax.random.PRNGKey(0)
    k1, k2 = jax.random.split(key)
    # integer categorical attribute keys
    candidate = jax.random.randint(k1, (B, D), 0, 4, jnp.int32)
    behaviors = jax.random.randint(k2, (B, S, D), 0, 4, jnp.int32)
    # plant exact matches so the retrieval mask is non-trivial
    behaviors = behaviors.at[:, ::17, :].set(candidate[:, None, :])

    mask = jax.block_until_ready(hard_search(candidate, behaviors))
    mask_ref = _ref_hard_search(candidate, behaviors)

    assert mask.shape == (B, S) and mask.dtype == jnp.bool_
    assert bool(jnp.array_equal(mask, mask_ref)), "hard search mask mismatch"
    assert int(mask.sum()) >= B, "planted exact matches were not detected"
    print("KERNEL_OK")
</pallas_src>

<mosaic_0001>
module attributes {stable_mosaic.version = 11 : i64} {
  func.func @_hard_search_kernel(%arg0: i32, %arg1: memref<4x8xi32, #tpu.memory_space<vmem>>, %arg2: memref<4x128x8xi32, #tpu.memory_space<vmem>>, %arg3: memref<4x128xi32, #tpu.memory_space<vmem>>) attributes {dimension_semantics = [#tpu.dimension_semantics<parallel>], iteration_bounds = array<i64: 1>, scalar_prefetch = 0 : i64, scratch_operands = 0 : i64, tpu.core_type = #tpu.core_type<tc>, window_params = [{transform_indices = @transform_0, window_bounds = array<i64: 4, 8>}, {transform_indices = @transform_1, window_bounds = array<i64: 4, 128, 8>}, {transform_indices = @transform_2, window_bounds = array<i64: 4, 128>}]} {
    %c0 = arith.constant 0 : index
    %c0_0 = arith.constant 0 : index
    %0 = vector.load %arg1[%c0, %c0_0] : memref<4x8xi32, #tpu.memory_space<vmem>>, vector<4x8xi32>
    %c0_1 = arith.constant 0 : index
    %c0_2 = arith.constant 0 : index
    %c0_3 = arith.constant 0 : index
    %1 = vector.load %arg2[%c0_1, %c0_2, %c0_3] : memref<4x128x8xi32, #tpu.memory_space<vmem>>, vector<4x128x8xi32>
    %2 = vector.shape_cast %0 : vector<4x8xi32> to vector<4x1x8xi32>
    %3 = vector.broadcast %2 : vector<4x1x8xi32> to vector<4x128x8xi32>
    %4 = arith.cmpi ne, %1, %3 : vector<4x128x8xi32>
    %5 = arith.extui %4 : vector<4x128x8xi1> to vector<4x128x8xi32>
    %cst = arith.constant dense<0> : vector<4x128xi32>
    %6 = vector.multi_reduction <add>, %5, %cst [2] : vector<4x128x8xi32> to vector<4x128xi32>
    %c0_i32 = arith.constant 0 : i32
    %7 = vector.broadcast %c0_i32 : i32 to vector<4x128xi32>
    %8 = arith.cmpi eq, %6, %7 : vector<4x128xi32>
    %9 = arith.extui %8 : vector<4x128xi1> to vector<4x128xi32>
    %c0_4 = arith.constant 0 : index
    %c0_5 = arith.constant 0 : index
    %10 = vector.load %arg3[%c0_4, %c0_5] : memref<4x128xi32, #tpu.memory_space<vmem>>, vector<4x128xi32>
    tpu.vector_store %arg3[%c0_4, %c0_5], %9 {strides = array<i32>} : memref<4x128xi32, #tpu.memory_space<vmem>>, vector<4x128xi32>,
    return
  }
  func.func @transform_0(%arg0: i32) -> (i32, i32) {
    %c0_i32 = arith.constant 0 : i32
    %c0_i32_0 = arith.constant 0 : i32
    return %arg0, %c0_i32 : i32, i32
  }
  func.func @transform_1(%arg0: i32) -> (i32, i32, i32) {
    %c0_i32 = arith.constant 0 : i32
    %c0_i32_0 = arith.constant 0 : i32
    %c0_i32_1 = arith.constant 0 : i32
    return %arg0, %c0_i32, %c0_i32_0 : i32, i32, i32
  }
  func.func @transform_2(%arg0: i32) -> (i32, i32) {
    %c0_i32 = arith.constant 0 : i32
    %c0_i32_0 = arith.constant 0 : i32
    return %arg0, %c0_i32 : i32, i32
  }
}

</mosaic_0001>

<bundles_post_ra>
// kernel: tpu_custom_call.1
= control target key start
LH: loop header
LB: loop body
LE: loop exit
PB: predicated region body
PF: predicated region fallthrough
CT: control target
= control target key end

     0   :  { %v88_v0 = vlaneseq  ;;  %v1603_v1 = vmov 1966171168   ;;  %vm245_vm0 = vcmask 64512   ;;  %s2484_s0 = inlined_call_operand.vmem [shape: s32[4,8], index: 0, kind: input, shape index: {}]   ;;  %s2485_s1 = inlined_call_operand.vmem [shape: s32[4,128,8], index: 1, kind: input, shape index: {}]   ;;  %s2486_s2 = inlined_call_operand.hbm [shape: s32[4,128], index: 2, kind: output, shape index: {}]  }
   0x1   :  { %v86_v2 = vunpack.c.l.s4 %v1603_v1  ;;  %v1627_v5 = vld.sshfl [vmem:[%s2484_s0] sm:$0x33 pattern:$0x75316420]  ;;  %v14_v8 = vld [vmem:[%s2485_s1 + $0x8] sm:$0xff]  ;;  %v15_v11 = vld [vmem:[%s2485_s1 + $0x10] sm:$0xff] }
   0x2   :  { %v1622_v3 = vshrl.u32 %v88_v0, 7  ;;  %v13_v10 = vld [vmem:[%s2485_s1] sm:$0xff]  ;;  %v16_v12 = vld [vmem:[%s2485_s1 + $0x18] sm:$0xff] }
   0x3   :  { %v87_v4 = vunpack.c.0.s8 %v86_v2 }
   0x4   :  { %v1633_v7 = vsub.s32 0, %v1622_v3 }
   0x5   :  { %v1630_v6 = vsub.s32 %v87_v4, %v1622_v3 }
   0x7   :  { %v1640_v9 = vrot.slane %v1627_v5, %v1630_v6 }
   0x9   :  { %v1653_v13 = vrot.slane %v1640_v9, %v1633_v7 }
   0xa   :  { %7 = vsyncpa [#allocation3], 0  ;;  %v1604_v14 = vmov 0   ;;  %v17_v26 = vld [vmem:[%s2485_s1 + $0x20] sm:$0xff]  ;;  %v18_v34 = vld [vmem:[%s2485_s1 + $0x28] sm:$0xff] }
   0xb   :  { %vm118_vm1 = vcmp.ne.s32.totalorder %v14_v8, %v1653_v13  ;;  %vm117_vm2 = vcmp.ne.s32.totalorder %v13_v10, %v1653_v13  ;;  %vm119_vm3 = vcmp.ne.s32.totalorder %v15_v11, %v1653_v13  ;;  %vm120_vm4 = vcmp.ne.s32.totalorder %v16_v12, %v1653_v13  ;;  %v19_v36 = vld [vmem:[%s2485_s1 + $0x30] sm:$0xff]  ;;  %v20_v44 = vld [vmem:[%s2485_s1 + $0x38] sm:$0xff]  ;;  %v21_v55 = vld [vmem:[%s2485_s1 + $0x40] sm:$0xff] }
   0xc   :  { %v182_v15 = vsel %vm118_vm1, 1, %v1604_v14  ;;  %v181_v16 = vsel %vm117_vm2, 1, %v1604_v14  ;;  %v183_v17 = vsel %vm119_vm3, 1, %v1604_v14  ;;  %v184_v21 = vsel %vm120_vm4, 1, %v1604_v14  ;;  %v22_v58 = vld [vmem:[%s2485_s1 + $0x48] sm:$0xff]  ;;  %v23_v2 = vld [vmem:[%s2485_s1 + $0x50] sm:$0xff] }
   0xd   :  { %v259_v18 = vsel %vm245_vm0, %v182_v15, 0  ;;  %v246_v19 = vsel %vm245_vm0, %v181_v16, 0  ;;  %v272_v20 = vsel %vm245_vm0, %v183_v17, 0  ;;  %v285_v30 = vsel %vm245_vm0, %v184_v21, 0  ;;  %v24_v16 = vld [vmem:[%s2485_s1 + $0x58] sm:$0xff] }
   0xe   :  { %v260_v22 = vand.u32 65535, %v259_v18  ;;  %v247_v23 = vand.u32 65535, %v246_v19  ;;  %v261_v24 = vshrl.u32 %v259_v18, 16  ;;  %v248_v25 = vshrl.u32 %v246_v19, 16 }
   0xf   :  { %v274_v29 = vshrl.u32 %v272_v20, 16  ;;  %v273_v33 = vand.u32 65535, %v272_v20  ;;  %vm121_vm5 = vcmp.ne.s32.totalorder %v17_v26, %v1653_v13  ;;  %v287_v37 = vshrl.u32 %v285_v30, 16 }
  0x10   :  { %v262_v27 = vcvt.s32.f32 %v260_v22  ;;  %v249_v28 = vcvt.s32.f32 %v247_v23  ;;  %v263_v31 = vcvt.s32.f32 %v261_v24  ;;  %v250_v32 = vcvt.s32.f32 %v248_v25 }
  0x11   :  { %v185_v35 = vsel %vm121_vm5, 1, %v1604_v14  ;;  %vm122_vm6 = vcmp.ne.s32.totalorder %v18_v34, %v1653_v13  ;;  %v276_v38 = vcvt.s32.f32 %v274_v29  ;;  %v275_v39 = vcvt.s32.f32 %v273_v33 }
  0x12   :  { %264 = vadd.xlane.f32.xlu1 %v262_v27  ;;  %251 = vadd.xlane.f32.xlu0 %v249_v28  ;;  %v286_v40 = vand.u32 65535, %v285_v30  ;;  %v298_v41 = vsel %vm245_vm0, %v185_v35, 0  ;;  %vm123_vm7 = vcmp.ne.s32.totalorder %v19_v36, %v1653_v13  ;;  %v186_v42 = vsel %vm122_vm6, 1, %v1604_v14  ;;  %v25_v27 = vld [vmem:[%s2485_s1 + $0x60] sm:$0xff]  ;;  %v26_v30 = vld [vmem:[%s2485_s1 + $0x68] sm:$0xff] }
  0x13   :  { %v289_v43 = vcvt.s32.f32 %v287_v37  ;;  %v300_v46 = vshrl.u32 %v298_v41, 16  ;;  %v299_v47 = vand.u32 65535, %v298_v41  ;;  %v187_v48 = vsel %vm123_vm7, 1, %v1604_v14 }
  0x14   :  { %v288_v45 = vcvt.s32.f32 %v286_v40  ;;  %v311_v49 = vsel %vm245_vm0, %v186_v42, 0  ;;  %vm124_vm8 = vcmp.ne.s32.totalorder %v20_v44, %v1653_v13  ;;  %v324_v50 = vsel %vm245_vm0, %v187_v48, 0 }
  0x15   :  { %v302_v51 = vcvt.s32.f32 %v300_v46  ;;  %v301_v52 = vcvt.s32.f32 %v299_v47  ;;  %v313_v53 = vshrl.u32 %v311_v49, 16  ;;  %v312_v54 = vand.u32 65535, %v311_v49 }
  0x16   :  { %266 = vadd.xlane.f32.xlu1 %v263_v31  ;;  %253 = vadd.xlane.f32.xlu0 %v250_v32  ;;  %v188_v56 = vsel %vm124_vm8, 1, %v1604_v14  ;;  %v326_v57 = vshrl.u32 %v324_v50, 16  ;;  %vm125_vm9 = vcmp.ne.s32.totalorder %v21_v55, %v1653_v13  ;;  %v325_v61 = vand.u32 65535, %v324_v50 }
  0x17   :  { %v315_v59 = vcvt.s32.f32 %v313_v53  ;;  %v314_v60 = vcvt.s32.f32 %v312_v54  ;;  %v337_v62 = vsel %vm245_vm0, %v188_v56, 0  ;;  %v189_v63 = vsel %vm125_vm9, 1, %v1604_v14  ;;  %v29_v56 = vld [vmem:[%s2485_s1 + $0x80] sm:$0xff] }
  0x18   :  { %vm126_vm10 = vcmp.ne.s32.totalorder %v22_v58, %v1653_v13  ;;  %v339_v1 = vshrl.u32 %v337_v62, 16  ;;  %v328_v4 = vcvt.s32.f32 %v326_v57  ;;  %v327_v8 = vcvt.s32.f32 %v325_v61 }
  0x19   :  { %v338_v10 = vand.u32 65535, %v337_v62  ;;  %v350_v11 = vsel %vm245_vm0, %v189_v63, 0  ;;  %v190_v12 = vsel %vm126_vm10, 1, %v1604_v14  ;;  %vm127_vm11 = vcmp.ne.s32.totalorder %v23_v2, %v1653_v13  ;;  %v31_v2 = vld [vmem:[%s2485_s1 + $0x90] sm:$0xff] }
  0x1a   :  { %279 = vadd.xlane.f32.xlu1 %v276_v38  ;;  %277 = vadd.xlane.f32.xlu0 %v275_v39  ;;  %v341_v15 = vcvt.s32.f32 %v339_v1  ;;  %v352_v18 = vshrl.u32 %v350_v11, 16  ;;  %v351_v19 = vand.u32 65535, %v350_v11  ;;  %v363_v20 = vsel %vm245_vm0, %v190_v12, 0  ;;  %v27_v38 = vld [vmem:[%s2485_s1 + $0x70] sm:$0xff] }
  0x1b   :  { %v340_v17 = vcvt.s32.f32 %v338_v10  ;;  %v191_v21 = vsel %vm127_vm11, 1, %v1604_v14  ;;  %vm128_vm12 = vcmp.ne.s32.totalorder %v24_v16, %v1653_v13  ;;  %v365_v22 = vshrl.u32 %v363_v20, 16  ;;  %v32_v16 = vld [vmem:[%s2485_s1 + $0x98] sm:$0xff] }
  0x1c   :  { %v354_v23 = vcvt.s32.f32 %v352_v18  ;;  %v353_v24 = vcvt.s32.f32 %v351_v19  ;;  %v364_v25 = vand.u32 65535, %v363_v20  ;;  %v376_v26 = vsel %vm245_vm0, %v191_v21, 0 }
  0x1d   :  { %v192_v28 = vsel %vm128_vm12, 1, %v1604_v14  ;;  %v378_v29 = vshrl.u32 %v376_v26, 16  ;;  %vm129_vm13 = vcmp.ne.s32.totalorder %v25_v27, %v1653_v13  ;;  %v367_v31 = vcvt.s32.f32 %v365_v22  ;;  %v33_v27 = vld [vmem:[%s2485_s1 + $0xa0] sm:$0xff] }
  0x1e   :  { %292 = vadd.xlane.f32.xlu1 %v289_v43  ;;  %290 = vadd.xlane.f32.xlu0 %v288_v45  ;;  %v366_v32 = vcvt.s32.f32 %v364_v25  ;;  %v377_v33 = vand.u32 65535, %v376_v26  ;;  %v389_v34 = vsel %vm245_vm0, %v192_v28, 0  ;;  %v193_v35 = vsel %vm129_vm13, 1, %v1604_v14 }
  0x1f   :  { %vm130_vm14 = vcmp.ne.s32.totalorder %v26_v30, %v1653_v13  ;;  %v84_v36 = vcombine.high %v1627_v5, %v1627_v5  ;;  %v391_v37 = vshrl.u32 %v389_v34, 16  ;;  %v380_v39 = vcvt.s32.f32 %v378_v29  ;;  %v28_v5 = vld [vmem:[%s2485_s1 + $0x78] sm:$0xff]  ;;  %v34_v30 = vld [vmem:[%s2485_s1 + $0xa8] sm:$0xff] }
  0x20   :  { %v379_v40 = vcvt.s32.f32 %v377_v33  ;;  %v390_v41 = vand.u32 65535, %v389_v34  ;;  %v402_v42 = vsel %vm245_vm0, %v193_v35, 0  ;;  %v194_v43 = vsel %vm130_vm14, 1, %v1604_v14 }
  0x21   :  { %vm131_vm15 = vcmp.ne.s32.totalorder %v27_v38, %v1653_v13  ;;  %v393_v44 = vcvt.s32.f32 %v391_v37  ;;  %v1736_v45 = vrot.slane %v84_v36, %v1630_v6  ;;  %v404_v47 = vshrl.u32 %v402_v42, 16  ;;  %v35_v37 = vld [vmem:[%s2485_s1 + $0xb0] sm:$0xff] }
  0x22   :  { %305 = vadd.xlane.f32.xlu1 %v302_v51  ;;  %303 = vadd.xlane.f32.xlu0 %v301_v52  ;;  %v392_v46 = vcvt.s32.f32 %v390_v41  ;;  %v403_v48 = vand.u32 65535, %v402_v42  ;;  %v415_v49 = vsel %vm245_vm0, %v194_v43, 0  ;;  %v195_v50 = vsel %vm131_vm15, 1, %v1604_v14 }
  0x23   :  { %vm132_vm1 = vcmp.ne.s32.totalorder %v28_v5, %v1653_v13  ;;  %v417_v51 = vshrl.u32 %v415_v49, 16  ;;  %v1743_v52 = vrot.slane %v1736_v45, %v1633_v7  ;;  %v406_v6 = vcvt.s32.f32 %v404_v47  ;;  %v30_v13 = vld [vmem:[%s2485_s1 + $0x88] sm:$0xff] }
  0x24   :  { %v405_v53 = vcvt.s32.f32 %v403_v48  ;;  %v416_v54 = vand.u32 65535, %v415_v49  ;;  %v428_v55 = vsel %vm245_vm0, %v195_v50, 0  ;;  %v196_v57 = vsel %vm132_vm1, 1, %v1604_v14 }
  0x25   :  { %v430_v58 = vshrl.u32 %v428_v55, 16  ;;  %vm133_vm2 = vcmp.ne.s32.totalorder %v29_v56, %v1743_v52  ;;  %v429_v61 = vand.u32 65535, %v428_v55  ;;  %v441_v62 = vsel %vm245_vm0, %v196_v57, 0  ;;  %v37_v55 = vld [vmem:[%s2485_s1 + $0xc0] sm:$0xff] }
  0x26   :  { %318 = vadd.xlane.f32.xlu1 %v315_v59  ;;  %316 = vadd.xlane.f32.xlu0 %v314_v60  ;;  %v419_v59 = vcvt.s32.f32 %v417_v51  ;;  %v418_v60 = vcvt.s32.f32 %v416_v54  ;;  %v197_v63 = vsel %vm133_vm2, 1, %v1604_v14  ;;  %vm134_vm3 = vcmp.ne.s32.totalorder %v30_v13, %v1743_v52 }
  0x27   :  { %v443_v1 = vshrl.u32 %v441_v62, 16  ;;  %v442_v10 = vand.u32 65535, %v441_v62  ;;  %v454_v11 = vsel %vm245_vm0, %v197_v63, 0  ;;  %v198_v12 = vsel %vm134_vm3, 1, %v1604_v14 }
  0x28   :  { %vm135_vm4 = vcmp.ne.s32.totalorder %v31_v2, %v1743_v52  ;;  %v456_v18 = vshrl.u32 %v454_v11, 16  ;;  %v455_v19 = vand.u32 65535, %v454_v11  ;;  %v467_v20 = vsel %vm245_vm0, %v198_v12, 0 }
  0x29   :  { %v199_v21 = vsel %vm135_vm4, 1, %v1604_v14  ;;  %vm136_vm5 = vcmp.ne.s32.totalorder %v32_v16, %v1743_v52  ;;  %v469_v22 = vshrl.u32 %v467_v20, 16  ;;  %v468_v25 = vand.u32 65535, %v467_v20 }
  0x2a   :  { %331 = vadd.xlane.f32.xlu1 %v328_v4  ;;  %329 = vadd.xlane.f32.xlu0 %v327_v8  ;;  %v432_v4 = vcvt.s32.f32 %v430_v58  ;;  %v431_v8 = vcvt.s32.f32 %v429_v61  ;;  %v480_v26 = vsel %vm245_vm0, %v199_v21, 0  ;;  %v200_v28 = vsel %vm136_vm5, 1, %v1604_v14  ;;  %v38_v58 = vld [vmem:[%s2485_s1 + $0xc8] sm:$0xff] }
  0x2b   :  { %v482_v29 = vshrl.u32 %v480_v26, 16  ;;  %vm137_vm6 = vcmp.ne.s32.totalorder %v33_v27, %v1743_v52  ;;  %v481_v33 = vand.u32 65535, %v480_v26  ;;  %v493_v34 = vsel %vm245_vm0, %v200_v28, 0  ;;  %v41_v26 = vld [vmem:[%s2485_s1 + $0xe0] sm:$0xff] }
  0x2c   :  { %v201_v35 = vsel %vm137_vm6, 1, %v1604_v14  ;;  %vm138_vm7 = vcmp.ne.s32.totalorder %v34_v30, %v1743_v52  ;;  %v495_v36 = vshrl.u32 %v493_v34, 16  ;;  %vm139_vm8 = vcmp.ne.s32.totalorder %v35_v37, %v1743_v52 }
  0x2d   :  { %v484_v38 = vcvt.s32.f32 %v482_v29  ;;  %v506_v41 = vsel %vm245_vm0, %v201_v35, 0  ;;  %v202_v42 = vsel %vm138_vm7, 1, %v1604_v14  ;;  %v203_v49 = vsel %vm139_vm8, 1, %v1604_v14  ;;  %v42_v29 = vld [vmem:[%s2485_s1 + $0xe8] sm:$0xff] }
  0x2e   :  { %344 = vadd.xlane.f32.xlu1 %v341_v15  ;;  %342 = vadd.xlane.f32.xlu0 %v340_v17  ;;  %v445_v15 = vcvt.s32.f32 %v443_v1  ;;  %v444_v17 = vcvt.s32.f32 %v442_v10  ;;  %v497_v43 = vcvt.s32.f32 %v495_v36  ;;  %v507_v47 = vand.u32 65535, %v506_v41  ;;  %v39_v1 = vld [vmem:[%s2485_s1 + $0xd0] sm:$0xff] }
  0x2f   :  { %v519_v48 = vsel %vm245_vm0, %v202_v42, 0  ;;  %v532_v54 = vsel %vm245_vm0, %v203_v49, 0  ;;  %vm141_vm10 = vcmp.ne.s32.totalorder %v37_v55, %v1743_v52  ;;  %vm142_vm11 = vcmp.ne.s32.totalorder %v38_v58, %v1743_v52  ;;  %v43_v36 = vld [vmem:[%s2485_s1 + $0xf0] sm:$0xff]  ;;  %v45_v55 = vld [vmem:[%s2485_s1 + $0x100] sm:$0xff] }
  0x30   :  { %v521_v50 = vshrl.u32 %v519_v48, 16  ;;  %v534_v57 = vshrl.u32 %v532_v54, 16  ;;  %v205_v62 = vsel %vm141_vm10, 1, %v1604_v14  ;;  %v206_v11 = vsel %vm142_vm11, 1, %v1604_v14 }
  0x31   :  { %v558_v10 = vsel %vm245_vm0, %v205_v62, 0  ;;  %vm143_vm12 = vcmp.ne.s32.totalorder %v39_v1, %v1743_v52  ;;  %vm145_vm14 = vcmp.ne.s32.totalorder %v41_v26, %v1743_v52  ;;  %vm146_vm15 = vcmp.ne.s32.totalorder %v42_v29, %v1743_v52 }
  0x32   :  { %357 = vadd.xlane.f32.xlu1 %v354_v23  ;;  %355 = vadd.xlane.f32.xlu0 %v353_v24  ;;  %v458_v23 = vcvt.s32.f32 %v456_v18  ;;  %v457_v24 = vcvt.s32.f32 %v455_v19  ;;  %v523_v13 = vcvt.s32.f32 %v521_v50  ;;  %v536_v2 = vcvt.s32.f32 %v534_v57 }
  0x33   :  { %v559_v18 = vand.u32 65535, %v558_v10  ;;  %v571_v19 = vsel %vm245_vm0, %v206_v11, 0  ;;  %v207_v20 = vsel %vm143_vm12, 1, %v1604_v14  ;;  %vm147_vm1 = vcmp.ne.s32.totalorder %v43_v36, %v1743_v52  ;;  %v48_v11 = vld [vmem:[%s2485_s1 + $0x118] sm:$0xff] }
  0x34   :  { %v573_v21 = vshrl.u32 %v571_v19, 16  ;;  %v211_v49 = vsel %vm147_vm1, 1, %v1604_v14  ;;  %v100_v36 = vcombine.high %v1736_v45, %v1736_v45 }
  0x36   :  { %370 = vadd.xlane.f32.xlu1 %v367_v31  ;;  %368 = vadd.xlane.f32.xlu0 %v366_v32  ;;  %v471_v31 = vcvt.s32.f32 %v469_v22  ;;  %v470_v32 = vcvt.s32.f32 %v468_v25  ;;  %v584_v25 = vsel %vm245_vm0, %v207_v20, 0  ;;  %v575_v30 = vcvt.s32.f32 %v573_v21  ;;  %v49_v20 = vld [vmem:[%s2485_s1 + $0x120] sm:$0xff] }
  0x37   :  { %v586_v28 = vshrl.u32 %v584_v25, 16 }
  0x39   :  { %v588_v37 = vcvt.s32.f32 %v586_v28 }
  0x3a   :  { %383 = vadd.xlane.f32.xlu1 %v380_v39  ;;  %381 = vadd.xlane.f32.xlu0 %v379_v40  ;;  %v483_v39 = vcvt.s32.f32 %v481_v33  ;;  %v494_v40 = vand.u32 65535, %v493_v34  ;;  %v209_v34 = vsel %vm145_vm14, 1, %v1604_v14 }
  0x3c   :  { %v496_v5 = vcvt.s32.f32 %v494_v40  ;;  %v610_v40 = vsel %vm245_vm0, %v209_v34, 0  ;;  %v51_v34 = vld [vmem:[%s2485_s1 + $0x130] sm:$0xff] }
  0x3e   :  { %396 = vadd.xlane.f32.xlu1 %v393_v44  ;;  %394 = vadd.xlane.f32.xlu0 %v392_v46  ;;  %v36_v44 = vld [vmem:[%s2485_s1 + $0xb8] sm:$0xff]  ;;  %v508_v46 = vshrl.u32 %v506_v41, 16  ;;  %v210_v41 = vsel %vm146_vm15, 1, %v1604_v14  ;;  %vm1217_vm15 = vcmask 130112  }
  0x3f   :  { %vm140_vm9 = vcmp.ne.s32.totalorder %v36_v44, %v1743_v52  ;;  %v99_v44 = vcombine.high %v1640_v9, %v1640_v9 }
  0x40   :  { %v510_v51 = vcvt.s32.f32 %v508_v46  ;;  %v204_v56 = vsel %vm140_vm9, 1, %v1604_v14  ;;  %v612_v46 = vshrl.u32 %v610_v40, 16 }
  0x41   :  { %v545_v61 = vsel %vm245_vm0, %v204_v56, 0 }
  0x42   :  { %409 = vadd.xlane.f32.xlu1 %v406_v6  ;;  %407 = vadd.xlane.f32.xlu0 %v405_v53  ;;  %v509_v6 = vcvt.s32.f32 %v507_v47  ;;  %v520_v53 = vand.u32 65535, %v519_v48  ;;  %v547_v63 = vshrl.u32 %v545_v61, 16  ;;  %v611_v47 = vand.u32 65535, %v610_v40 }
  0x43   :  { %v623_v48 = vsel %vm245_vm0, %v210_v41, 0 }
  0x44   :  { %v549_v12 = vcvt.s32.f32 %v547_v63  ;;  %v625_v50 = vshrl.u32 %v623_v48, 16  ;;  %v624_v9 = vand.u32 65535, %v623_v48 }
  0x46   :  { %422 = vadd.xlane.f32.xlu1 %v419_v59  ;;  %420 = vadd.xlane.f32.xlu0 %v418_v60  ;;  %v522_v59 = vcvt.s32.f32 %v520_v53  ;;  %v533_v60 = vand.u32 65535, %v532_v54  ;;  %v613_v53 = vcvt.s32.f32 %v611_v47  ;;  %v636_v54 = vsel %vm245_vm0, %v211_v49, 0 }
  0x47   :  { %v638_v57 = vshrl.u32 %v636_v54, 16  ;;  %v627_v58 = vcvt.s32.f32 %v625_v50 }
  0x49   :  { %v640_v63 = vcvt.s32.f32 %v638_v57 }
  0x4a   :  { %435 = vadd.xlane.f32.xlu1 %v432_v4  ;;  %433 = vadd.xlane.f32.xlu0 %v431_v8  ;;  %v535_v4 = vcvt.s32.f32 %v533_v60  ;;  %v546_v8 = vand.u32 65535, %v545_v61 }
  0x4c   :  { %v548_v16 = vcvt.s32.f32 %v546_v8 }
  0x4e   :  { %448 = vadd.xlane.f32.xlu1 %v445_v15  ;;  %446 = vadd.xlane.f32.xlu0 %v444_v17  ;;  %v40_v15 = vld [vmem:[%s2485_s1 + $0xd8] sm:$0xff]  ;;  %v560_v17 = vshrl.u32 %v558_v10, 16 }
  0x4f   :  { %vm144_vm13 = vcmp.ne.s32.totalorder %v40_v15, %v1743_v52 }
  0x50   :  { %v562_v22 = vcvt.s32.f32 %v560_v17  ;;  %v208_v27 = vsel %vm144_vm13, 1, %v1604_v14 }
  0x51   :  { %v597_v33 = vsel %vm245_vm0, %v208_v27, 0 }
  0x52   :  { %461 = vadd.xlane.f32.xlu1 %v458_v23  ;;  %459 = vadd.xlane.f32.xlu0 %v457_v24  ;;  %v561_v23 = vcvt.s32.f32 %v559_v18  ;;  %v572_v24 = vand.u32 65535, %v571_v19  ;;  %v599_v35 = vshrl.u32 %v597_v33, 16 }
  0x54   :  { %v601_v42 = vcvt.s32.f32 %v599_v35  ;;  %v52_v35 = vld [vmem:[%s2485_s1 + $0x138] sm:$0xff] }
  0x56   :  { %474 = vadd.xlane.f32.xlu1 %v471_v31  ;;  %472 = vadd.xlane.f32.xlu0 %v470_v32  ;;  %v574_v31 = vcvt.s32.f32 %v572_v24  ;;  %v585_v32 = vand.u32 65535, %v584_v25 }
  0x5a   :  { %487 = vadd.xlane.f32.xlu1 %v484_v38  ;;  %485 = vadd.xlane.f32.xlu0 %v483_v39  ;;  %v587_v38 = vcvt.s32.f32 %v585_v32  ;;  %v598_v39 = vand.u32 65535, %v597_v33 }
  0x5e   :  { %500 = vadd.xlane.f32.xlu1 %v497_v43  ;;  %498 = vadd.xlane.f32.xlu0 %v496_v5  ;;  %v44_v43 = vld [vmem:[%s2485_s1 + $0xf8] sm:$0xff]  ;;  %v600_v5 = vcvt.s32.f32 %v598_v39 }
  0x5f   :  { %vm148_vm2 = vcmp.ne.s32.totalorder %v44_v43, %v1743_v52  ;;  %v46_v52 = vld [vmem:[%s2485_s1 + $0x108] sm:$0xff]  ;;  %v1897_v43 = vand.u32 127, %v88_v0  ;;  %v63_v0 = vld [vmem:[%s2485_s1 + $0x190] sm:$0xff] }
  0x60   :  { %v212_v56 = vsel %vm148_vm2, 1, %v1604_v14  ;;  %vm1224_vm2 = vcmask 195712  }
  0x61   :  { %v649_v60 = vsel %vm245_vm0, %v212_v56, 0  ;;  %v1219_v57 = vadd.s32 4294967280, %v1897_v43 }
  0x62   :  { %513 = vadd.xlane.f32.xlu1 %v510_v51  ;;  %511 = vadd.xlane.f32.xlu0 %v509_v6  ;;  %v1844_v51 = vrot.slane %v99_v44, %v1633_v7  ;;  %v614_v6 = vcvt.s32.f32 %v612_v46  ;;  %v651_v62 = vshrl.u32 %v649_v60, 16  ;;  %v61_v44 = vld [vmem:[%s2485_s1 + $0x180] sm:$0xff] }
  0x64   :  { %vm149_vm3 = vcmp.ne.s32.totalorder %v45_v55, %v1844_v51  ;;  %vm150_vm4 = vcmp.ne.s32.totalorder %v46_v52, %v1844_v51  ;;  %vm152_vm6 = vcmp.ne.s32.totalorder %v48_v11, %v1844_v51  ;;  %vm153_vm7 = vcmp.ne.s32.totalorder %v49_v20, %v1844_v51 }
  0x65   :  { %v213_v61 = vsel %vm149_vm3, 1, %v1604_v14  ;;  %v214_v10 = vsel %vm150_vm4, 1, %v1604_v14  ;;  %v216_v25 = vsel %vm152_vm6, 1, %v1604_v14  ;;  %v217_v33 = vsel %vm153_vm7, 1, %v1604_v14 }
  0x66   :  { %526 = vadd.xlane.f32.xlu1 %v523_v13  ;;  %524 = vadd.xlane.f32.xlu0 %v522_v59  ;;  %v626_v13 = vcvt.s32.f32 %v624_v9  ;;  %v637_v59 = vand.u32 65535, %v636_v54  ;;  %v662_v8 = vsel %vm245_vm0, %v213_v61, 0  ;;  %v675_v18 = vsel %vm245_vm0, %v214_v10, 0 }
  0x67   :  { %v663_v17 = vand.u32 65535, %v662_v8  ;;  %v677_v21 = vshrl.u32 %v675_v18, 16  ;;  %v701_v29 = vsel %vm245_vm0, %v216_v25, 0  ;;  %vm155_vm9 = vcmp.ne.s32.totalorder %v51_v34, %v1844_v51 }
  0x68   :  { %v639_v1 = vcvt.s32.f32 %v637_v59  ;;  %vm156_vm10 = vcmp.ne.s32.totalorder %v52_v35, %v1844_v51  ;;  %v702_v41 = vand.u32 65535, %v701_v29  ;;  %v219_v48 = vsel %vm155_vm9, 1, %v1604_v14 }
  0x69   :  { %v665_v24 = vcvt.s32.f32 %v663_v17  ;;  %v679_v27 = vcvt.s32.f32 %v677_v21  ;;  %v740_v9 = vsel %vm245_vm0, %v219_v48, 0  ;;  %v1226_v52 = vadd.s32 4294967272, %v1897_v43 }
  0x6a   :  { %539 = vadd.xlane.f32.xlu1 %v536_v2  ;;  %537 = vadd.xlane.f32.xlu0 %v535_v4  ;;  %v650_v2 = vand.u32 65535, %v649_v60  ;;  %v47_v4 = vld [vmem:[%s2485_s1 + $0x110] sm:$0xff]  ;;  %v704_v50 = vcvt.s32.f32 %v702_v41  ;;  %v742_v61 = vshrl.u32 %v740_v9, 16  ;;  %v1931_v10 = vsub.s32 %v1897_v43, %v1622_v3 }
  0x6b   :  { %vm151_vm5 = vcmp.ne.s32.totalorder %v47_v4, %v1844_v51  ;;  %v1233_v11 = vadd.s32 4294967264, %v1897_v43  ;;  %vm1231_vm6 = vcmask 261312   ;;  %vm1238_vm9 = vcmask 326912  }
  0x6c   :  { %v652_v15 = vcvt.s32.f32 %v650_v2  ;;  %v215_v19 = vsel %vm151_vm5, 1, %v1604_v14 }
  0x6d   :  { %v688_v26 = vsel %vm245_vm0, %v215_v19, 0  ;;  %v1247_v19 = vadd.s32 4294967248, %v1897_v43 }
  0x6e   :  { %552 = vadd.xlane.f32.xlu1 %v549_v12  ;;  %550 = vadd.xlane.f32.xlu0 %v548_v16  ;;  %v653_v12 = vcvt.s32.f32 %v651_v62  ;;  %v664_v16 = vshrl.u32 %v662_v8, 16  ;;  %v689_v32 = vand.u32 65535, %v688_v26  ;;  %v741_v62 = vand.u32 65535, %v740_v9 }
  0x70   :  { %v691_v40 = vcvt.s32.f32 %v689_v32  ;;  %v743_v25 = vcvt.s32.f32 %v741_v62 }
  0x72   :  { %565 = vadd.xlane.f32.xlu1 %v562_v22  ;;  %563 = vadd.xlane.f32.xlu0 %v561_v23  ;;  %v676_v22 = vand.u32 65535, %v675_v18  ;;  %v666_v23 = vcvt.s32.f32 %v664_v16  ;;  %v1939_v16 = vsub.s32 %v1219_v57, %v1622_v3 }
  0x74   :  { %v678_v28 = vcvt.s32.f32 %v676_v22  ;;  %v1947_v22 = vsub.s32 %v1226_v52, %v1622_v3 }
  0x76   :  { %578 = vadd.xlane.f32.xlu1 %v575_v30  ;;  %576 = vadd.xlane.f32.xlu0 %v574_v31  ;;  %v50_v30 = vld [vmem:[%s2485_s1 + $0x128] sm:$0xff]  ;;  %v690_v31 = vshrl.u32 %v688_v26, 16 }
  0x77   :  { %vm154_vm8 = vcmp.ne.s32.totalorder %v50_v30, %v1844_v51 }
  0x78   :  { %v692_v39 = vcvt.s32.f32 %v690_v31  ;;  %v218_v45 = vsel %vm154_vm8, 1, %v1604_v14  ;;  %v1958_v31 = vsub.s32 %v1233_v11, %v1622_v3 }
  0x7a   :  { %591 = vadd.xlane.f32.xlu1 %v588_v37  ;;  %589 = vadd.xlane.f32.xlu0 %v587_v38  ;;  %v703_v37 = vshrl.u32 %v701_v29, 16  ;;  %v714_v38 = vsel %vm245_vm0, %v217_v33, 0 }
  0x7b   :  { %v716_v46 = vshrl.u32 %v714_v38, 16  ;;  %v715_v47 = vand.u32 65535, %v714_v38 }
  0x7c   :  { %v705_v49 = vcvt.s32.f32 %v703_v37  ;;  %v1964_v37 = vsub.s32 %v1247_v19, %v1622_v3 }
  0x7d   :  { %v718_v55 = vcvt.s32.f32 %v716_v46  ;;  %v717_v56 = vcvt.s32.f32 %v715_v47  ;;  %v66_v46 = vld [vmem:[%s2485_s1 + $0x1a8] sm:$0xff] }
  0x7e   :  { %604 = vadd.xlane.f32.xlu1 %v601_v42  ;;  %602 = vadd.xlane.f32.xlu0 %v600_v5  ;;  %v1894_v42 = vrot.slane %v100_v36, %v1633_v7  ;;  %v62_v5 = vld [vmem:[%s2485_s1 + $0x188] sm:$0xff]  ;;  %v220_v7 = vsel %vm156_vm10, 1, %v1604_v14 }
  0x7f   :  { %v1917_v54 = vsel %vm245_vm0, %v220_v7, 0 }
  0x80   :  { %vm165_vm11 = vcmp.ne.s32.totalorder %v61_v44, %v1894_v42  ;;  %vm166_vm12 = vcmp.ne.s32.totalorder %v62_v5, %v1894_v42  ;;  %vm167_vm13 = vcmp.ne.s32.totalorder %v63_v0, %v1894_v42  ;;  %vm170_vm3 = vcmp.ne.s32.totalorder %v66_v46, %v1894_v42 }
  0x81   :  { %v229_v59 = vsel %vm165_vm11, 1, %v1604_v14  ;;  %v230_v60 = vsel %vm166_vm12, 1, %v1604_v14  ;;  %v234_v19 = vsel %vm170_vm3, 1, %v1604_v14  ;;  %vm1245_vm11 = vcmask 392512  }
  0x82   :  { %617 = vadd.xlane.f32.xlu1 %v614_v6  ;;  %615 = vadd.xlane.f32.xlu0 %v613_v53  ;;  %v727_v6 = vsel %vm245_vm0, %v218_v45, 0  ;;  %v1212_v53 = vadd.s32 4294967288, %v1897_v43  ;;  %v1942_v17 = vsel %vm245_vm0, %v229_v59, 0  ;;  %v883_v18 = vsel %vm245_vm0, %v230_v60, 0  ;;  %v67_v59 = vld [vmem:[%s2485_s1 + $0x1b0] sm:$0xff] }
  0x83   :  { %v872_v30 = vshrl.u32 %v1942_v17, 16  ;;  %v885_v32 = vshrl.u32 %v883_v18, 16  ;;  %v884_v38 = vand.u32 65535, %v883_v18  ;;  %vm171_vm7 = vcmp.ne.s32.totalorder %v67_v59, %v1894_v42  ;;  %v54_v59 = vld [vmem:[%s2485_s1 + $0x148] sm:$0xff] }
  0x84   :  { %v1927_v8 = vsub.s32 %v1212_v53, %v1622_v3 }
  0x85   :  { %v874_v7 = vcvt.s32.f32 %v872_v30  ;;  %v887_v0 = vcvt.s32.f32 %v885_v32  ;;  %v1261_v30 = vadd.s32 4294967232, %v1897_v43 }
  0x86   :  { %630 = vadd.xlane.f32.xlu1 %v627_v58  ;;  %628 = vadd.xlane.f32.xlu0 %v626_v13  ;;  %v729_v58 = vshrl.u32 %v727_v6, 16  ;;  %v728_v13 = vand.u32 65535, %v727_v6 }
  0x88   :  { %v731_v20 = vcvt.s32.f32 %v729_v58  ;;  %v730_v21 = vcvt.s32.f32 %v728_v13 }
  0x8a   :  { %643 = vadd.xlane.f32.xlu1 %v640_v63  ;;  %641 = vadd.xlane.f32.xlu0 %v639_v1  ;;  %v754_v63 = vand.u32 65535, %v1917_v54  ;;  %v231_v1 = vsel %vm167_vm13, 1, %v1604_v14 }
  0x8c   :  { %v1950_v26 = vcvt.s32.f32 %v754_v63 }
  0x8e   :  { %656 = vadd.xlane.f32.xlu1 %v653_v12  ;;  %654 = vadd.xlane.f32.xlu0 %v652_v15  ;;  %v1240_v12 = vadd.s32 4294967256, %v1897_v43  ;;  %v64_v15 = vld [vmem:[%s2485_s1 + $0x198] sm:$0xff] }
  0x8f   :  { %vm168_vm14 = vcmp.ne.s32.totalorder %v64_v15, %v1894_v42 }
  0x90   :  { %v1961_v33 = vsub.s32 %v1240_v12, %v1622_v3 }
  0x92   :  { %669 = vadd.xlane.f32.xlu1 %v666_v23  ;;  %667 = vadd.xlane.f32.xlu0 %v665_v24  ;;  %v896_v23 = vsel %vm245_vm0, %v231_v1, 0  ;;  %v744_v24 = vcvt.s32.f32 %v742_v61 }
  0x93   :  { %v898_v36 = vshrl.u32 %v896_v23, 16 }
  0x96   :  { %682 = vadd.xlane.f32.xlu1 %v679_v27  ;;  %680 = vadd.xlane.f32.xlu0 %v678_v28  ;;  %v65_v27 = vld [vmem:[%s2485_s1 + $0x1a0] sm:$0xff] }
  0x97   :  { %vm169_vm1 = vcmp.ne.s32.totalorder %v65_v27, %v1894_v42 }
  0x98   :  { %v233_v52 = vsel %vm169_vm1, 1, %v1604_v14  ;;  %vm158_vm1 = vcmp.ne.s32.totalorder %v54_v59, %v1844_v51 }
  0x99   :  { %v1990_v18 = vsel %vm245_vm0, %v233_v52, 0 }
  0x9a   :  { %695 = vadd.xlane.f32.xlu1 %v692_v39  ;;  %693 = vadd.xlane.f32.xlu0 %v691_v40  ;;  %v871_v39 = vand.u32 65535, %v1942_v17  ;;  %v232_v40 = vsel %vm168_vm14, 1, %v1604_v14  ;;  %vm1252_vm14 = vcmask 458112  }
  0x9b   :  { %v909_v57 = vsel %vm245_vm0, %v232_v40, 0  ;;  %v235_v40 = vsel %vm171_vm7, 1, %v1604_v14 }
  0x9c   :  { %v873_v1 = vcvt.s32.f32 %v871_v39  ;;  %v911_v17 = vshrl.u32 %v909_v57, 16  ;;  %v2007_v39 = vsel %vm245_vm0, %v234_v19, 0 }
  0x9e   :  { %708 = vadd.xlane.f32.xlu1 %v705_v49  ;;  %706 = vadd.xlane.f32.xlu0 %v704_v50  ;;  %v897_v49 = vand.u32 65535, %v896_v23  ;;  %v1254_v50 = vadd.s32 4294967240, %v1897_v43 }
  0x9f   :  { %v265_v2 = vpop.xlane.xlu1 %264  ;;  %v252_v4 = vpop.xlane.xlu0 %251 }
  0xa0   :  { %v268_v41 = vcvt.f32.s32 %v265_v2  ;;  %v255_v45 = vcvt.f32.s32 %v252_v4  ;;  %v1985_v2 = vcvt.s32.f32 %v897_v49  ;;  %v1268_v49 = vadd.s32 4294967224, %v1897_v43 }
  0xa2   :  { %721 = vadd.xlane.f32.xlu1 %v718_v55  ;;  %719 = vadd.xlane.f32.xlu0 %v717_v56  ;;  %v900_v55 = vcvt.s32.f32 %v898_v36  ;;  %v1973_v56 = vcvt.s32.f32 %v884_v38  ;;  %v755_v36 = vshrl.u32 %v1917_v54, 16  ;;  %v913_v38 = vcvt.s32.f32 %v911_v17  ;;  %v53_v54 = vld [vmem:[%s2485_s1 + $0x140] sm:$0xff] }
  0xa3   :  { %v267_v28 = vpop.xlane.xlu1 %266  ;;  %v254_v29 = vpop.xlane.xlu0 %253  ;;  %vm157_vm12 = vcmp.ne.s32.totalorder %v53_v54, %v1844_v51  ;;  %v55_v54 = vld [vmem:[%s2485_s1 + $0x150] sm:$0xff] }
  0xa4   :  { %v269_v34 = vcvt.f32.s32 %v267_v28  ;;  %v256_v35 = vcvt.f32.s32 %v254_v29  ;;  %v2000_v28 = vsub.s32 %v1254_v50, %v1622_v3  ;;  %v910_v29 = vand.u32 65535, %v909_v57 }
  0xa5   :  { %v2026_v57 = vsel %vm245_vm0, %v235_v40, 0  ;;  %v222_v40 = vsel %vm158_vm1, 1, %v1604_v14  ;;  %vm1273_vm1 = vcmask 654912  }
  0xa6   :  { %v270_v44 = vshll.u32 %v269_v34, 16  ;;  %v257_v5 = vshll.u32 %v256_v35, 16  ;;  %734 = vadd.xlane.f32.xlu1 %v731_v20  ;;  %732 = vadd.xlane.f32.xlu0 %v730_v21  ;;  %v950_v19 = vshrl.u32 %v2026_v57, 16 }
  0xa7   :  { %v280_v47 = vpop.xlane.xlu1 %279  ;;  %v278_v48 = vpop.xlane.xlu0 %277 }
  0xa8   :  { %v271_v6 = vadd.s32 %v270_v44, %v268_v41  ;;  %v258_v53 = vadd.s32 %v257_v5, %v255_v45  ;;  %v282_v9 = vcvt.f32.s32 %v280_v47  ;;  %v281_v13 = vcvt.f32.s32 %v278_v48 }
  0xa9   :  { %v912_v48 = vcvt.s32.f32 %v910_v29 }
  0xaa   :  { %vm1079_vm4 = vcmp.eq.s32.totalorder %v271_v6, 0  ;;  %vm1078_vm5 = vcmp.eq.s32.totalorder %v258_v53, 0  ;;  %v283_v58 = vshll.u32 %v282_v9, 16  ;;  %747 = vadd.xlane.f32.xlu1 %v744_v24  ;;  %745 = vadd.xlane.f32.xlu0 %v743_v25  ;;  %v937_v53 = vshrl.u32 %v2007_v39, 16 }
  0xab   :  { %v1143_v60 = vsel %vm1079_vm4, 1, %v1604_v14  ;;  %v1142_v61 = vsel %vm1078_vm5, 1, %v1604_v14  ;;  %v293_v62 = vpop.xlane.xlu1 %292  ;;  %v291_v63 = vpop.xlane.xlu0 %290  ;;  %vm1259_vm5 = vcmask 523712  }
  0xac   :  { %v1216_v4 = vrot.slane %v1143_v60, %v1927_v8  ;;  %v1211_v11 = vrot.slane %v1142_v61, %v1931_v10  ;;  %v284_v12 = vadd.s32 %v283_v58, %v281_v13  ;;  %v295_v15 = vcvt.f32.s32 %v293_v62  ;;  %v68_v60 = vld [vmem:[%s2485_s1 + $0x1b8] sm:$0xff] }
  0xad   :  { %v294_v23 = vcvt.f32.s32 %v291_v63  ;;  %v939_v17 = vcvt.s32.f32 %v937_v53  ;;  %vm172_vm3 = vcmp.ne.s32.totalorder %v68_v60, %v1894_v42 }
  0xae   :  { %v1218_v20 = vsel %vm1217_vm15, %v1216_v4, %v1211_v11  ;;  %vm1080_vm8 = vcmp.eq.s32.totalorder %v284_v12, 0  ;;  %v296_v21 = vshll.u32 %v295_v15, 16  ;;  %758 = vadd.xlane.f32.xlu0 %v1950_v26  ;;  %877 = vadd.xlane.f32.xlu1 %v874_v7  ;;  %v924_v26 = vshrl.u32 %v1990_v18, 16 }
  0xaf   :  { %v1144_v24 = vsel %vm1080_vm8, 1, %v1604_v14  ;;  %v306_v25 = vpop.xlane.xlu1 %305  ;;  %v304_v27 = vpop.xlane.xlu0 %303  ;;  %v2018_v7 = vsub.s32 %v1261_v30, %v1622_v3  ;;  %v2039_v4 = vsub.s32 %v1268_v49, %v1622_v3  ;;  %v923_v11 = vand.u32 65535, %v1990_v18 }
  0xb0   :  { %v1223_v32 = vrot.slane %v1144_v24, %v1939_v16  ;;  %v297_v34 = vadd.s32 %v296_v21, %v294_v23  ;;  %v308_v35 = vcvt.f32.s32 %v306_v25  ;;  %v307_v44 = vcvt.f32.s32 %v304_v27  ;;  %v69_v24 = vld [vmem:[%s2485_s1 + $0x1c0] sm:$0xff] }
  0xb1   :  { %v926_v9 = vcvt.s32.f32 %v924_v26  ;;  %v925_v30 = vcvt.s32.f32 %v923_v11  ;;  %v1282_v26 = vadd.s32 4294967208, %v1897_v43  ;;  %vm173_vm7 = vcmp.ne.s32.totalorder %v69_v24, %v1894_v42 }
  0xb2   :  { %v1225_v41 = vsel %vm1224_vm2, %v1223_v32, %v1218_v20  ;;  %vm1081_vm10 = vcmp.eq.s32.totalorder %v297_v34, 0  ;;  %v309_v45 = vshll.u32 %v308_v35, 16  ;;  %890 = vadd.xlane.f32.xlu0 %v887_v0  ;;  %903 = vadd.xlane.f32.xlu1 %v900_v55  ;;  %v2023_v55 = vcvt.s32.f32 %v755_v36 }
  0xb3   :  { %v1145_v5 = vsel %vm1081_vm10, 1, %v1604_v14  ;;  %v319_v46 = vpop.xlane.xlu1 %318  ;;  %v317_v47 = vpop.xlane.xlu0 %316  ;;  %v221_v20 = vsel %vm157_vm12, 1, %v1604_v14  ;;  %v936_v34 = vand.u32 65535, %v2007_v39  ;;  %vm1266_vm10 = vcmask 589312  }
  0xb4   :  { %v1230_v50 = vrot.slane %v1145_v5, %v1947_v22  ;;  %v310_v6 = vadd.s32 %v309_v45, %v307_v44  ;;  %v321_v0 = vcvt.f32.s32 %v319_v46  ;;  %v320_v13 = vcvt.f32.s32 %v317_v47 }
  0xb5   :  { %v952_v49 = vcvt.s32.f32 %v950_v19  ;;  %vm159_vm12 = vcmp.ne.s32.totalorder %v55_v54, %v1844_v51 }
  0xb6   :  { %v1232_v52 = vsel %vm1231_vm6, %v1230_v50, %v1225_v41  ;;  %vm1082_vm13 = vcmp.eq.s32.totalorder %v310_v6, 0  ;;  %v322_v58 = vshll.u32 %v321_v0, 16  ;;  %888 = vadd.xlane.f32.xlu1 %v1973_v56  ;;  %875 = vadd.xlane.f32.xlu0 %v873_v1  ;;  %v1275_v56 = vadd.s32 4294967216, %v1897_v43 }
  0xb7   :  { %v1146_v61 = vsel %vm1082_vm13, 1, %v1604_v14  ;;  %v332_v62 = vpop.xlane.xlu1 %331  ;;  %v330_v63 = vpop.xlane.xlu0 %329  ;;  %v236_v41 = vsel %vm172_vm3, 1, %v1604_v14  ;;  %v938_v50 = vcvt.s32.f32 %v936_v34 }
  0xb8   :  { %v1237_v1 = vrot.slane %v1146_v61, %v1958_v31  ;;  %v323_v12 = vadd.s32 %v322_v58, %v320_v13  ;;  %v334_v15 = vcvt.f32.s32 %v332_v62  ;;  %v333_v23 = vcvt.f32.s32 %v330_v63  ;;  %v70_v62 = vld [vmem:[%s2485_s1 + $0x1c8] sm:$0xff] }
  0xb9   :  { %v2057_v32 = vsub.s32 %v1275_v56, %v1622_v3  ;;  %v2086_v58 = vsel %vm245_vm0, %v236_v41, 0  ;;  %v237_v13 = vsel %vm173_vm7, 1, %v1604_v14  ;;  %vm174_vm3 = vcmp.ne.s32.totalorder %v70_v62, %v1894_v42 }
  0xba   :  { %v1239_v21 = vsel %vm1238_vm9, %v1237_v1, %v1232_v52  ;;  %vm1083_vm4 = vcmp.eq.s32.totalorder %v323_v12, 0  ;;  %v335_v18 = vshll.u32 %v334_v15, 16  ;;  %901 = vadd.xlane.f32.xlu1 %v1985_v2  ;;  %916 = vadd.xlane.f32.xlu0 %v913_v38  ;;  %v2062_v38 = vsel %vm245_vm0, %v221_v20, 0 }
  0xbb   :  { %v1147_v25 = vsel %vm1083_vm4, 1, %v1604_v14  ;;  %v345_v27 = vpop.xlane.xlu1 %344  ;;  %v343_v29 = vpop.xlane.xlu0 %342  ;;  %v768_v6 = vshrl.u32 %v2062_v38, 16  ;;  %v767_v1 = vand.u32 65535, %v2062_v38  ;;  %vm2487_vm7 = vcmask 720512  }
  0xbc   :  { %v1244_v35 = vrot.slane %v1147_v25, %v1961_v33  ;;  %v336_v36 = vadd.s32 %v335_v18, %v333_v23  ;;  %v347_v2 = vcvt.f32.s32 %v345_v27  ;;  %v346_v44 = vcvt.f32.s32 %v343_v29  ;;  %v56_v29 = vld [vmem:[%s2485_s1 + $0x158] sm:$0xff] }
  0xbd   :  { %v2104_v18 = vsel %vm245_vm0, %v237_v13, 0  ;;  %v223_v23 = vsel %vm159_vm12, 1, %v1604_v14 }
  0xbe   :  { %v1246_v39 = vsel %vm1245_vm11, %v1244_v35, %v1239_v21  ;;  %vm1084_vm8 = vcmp.eq.s32.totalorder %v336_v36, 0  ;;  %v348_v45 = vshll.u32 %v347_v2, 16  ;;  %914 = vadd.xlane.f32.xlu1 %v912_v48  ;;  %929 = vadd.xlane.f32.xlu0 %v926_v9  ;;  %v2080_v48 = vsel %vm245_vm0, %v222_v40, 0 }
  0xbf   :  { %v1148_v5 = vsel %vm1084_vm8, 1, %v1604_v14  ;;  %v358_v46 = vpop.xlane.xlu1 %357  ;;  %v356_v47 = vpop.xlane.xlu0 %355  ;;  %v2083_v9 = vsub.s32 %v1282_v26, %v1622_v3  ;;  %v780_v12 = vand.u32 65535, %v2080_v48  ;;  %v781_v15 = vshrl.u32 %v2080_v48, 16 }
  0xc0   :  { %v1251_v0 = vrot.slane %v1148_v5, %v1964_v37  ;;  %v349_v53 = vadd.s32 %v348_v45, %v346_v44  ;;  %v360_v52 = vcvt.f32.s32 %v358_v46  ;;  %v359_v61 = vcvt.f32.s32 %v356_v47 }
  0xc1   :  { %v963_v21 = vshrl.u32 %v2086_v58, 16  ;;  %v783_v2 = vcvt.s32.f32 %v781_v15  ;;  %v1289_v26 = vadd.s32 4294967200, %v1897_v43  ;;  %v949_v40 = vand.u32 65535, %v2026_v57 }
  0xc2   :  { %v1253_v59 = vsel %vm1252_vm14, %v1251_v0, %v1246_v39  ;;  %vm1085_vm13 = vcmp.eq.s32.totalorder %v349_v53, 0  ;;  %v361_v60 = vshll.u32 %v360_v52, 16  ;;  %760 = vadd.xlane.f32.xlu1 %v2023_v55  ;;  %942 = vadd.xlane.f32.xlu0 %v939_v17  ;;  %v770_v17 = vcvt.s32.f32 %v768_v6 }
  0xc3   :  { %v1149_v63 = vsel %vm1085_vm13, 1, %v1604_v14  ;;  %v371_v11 = vpop.xlane.xlu1 %370  ;;  %v369_v56 = vpop.xlane.xlu0 %368  ;;  %v965_v44 = vcvt.s32.f32 %v963_v21  ;;  %v2120_v54 = vsel %vm245_vm0, %v223_v23, 0  ;;  %v238_v5 = vsel %vm174_vm3, 1, %v1604_v14 }
  0xc4   :  { %v1258_v19 = vrot.slane %v1149_v63, %v2000_v28  ;;  %v362_v20 = vadd.s32 %v361_v60, %v359_v61  ;;  %v373_v55 = vcvt.f32.s32 %v371_v11  ;;  %v372_v27 = vcvt.f32.s32 %v369_v56 }
  0xc5   :  { %vm160_vm8 = vcmp.ne.s32.totalorder %v56_v29, %v1844_v51  ;;  %vm1287_vm13 = vcmask 786112   ;;  %v962_v52 = vand.u32 65535, %v2086_v58  ;;  %v2133_v13 = vsub.s32 %v1289_v26, %v1622_v3 }
  0xc6   :  { %v1260_v24 = vsel %vm1259_vm5, %v1258_v19, %v1253_v59  ;;  %vm1086_vm4 = vcmp.eq.s32.totalorder %v362_v20, 0  ;;  %v374_v25 = vshll.u32 %v373_v55, 16  ;;  %955 = vadd.xlane.f32.xlu1 %v952_v49  ;;  %927 = vadd.xlane.f32.xlu0 %v925_v30  ;;  %v976_v30 = vshrl.u32 %v2104_v18, 16  ;;  %v71_v49 = vld [vmem:[%s2485_s1 + $0x1d0] sm:$0xff]  ;;  %v57_v20 = vld [vmem:[%s2485_s1 + $0x160] sm:$0xff] }
  0xc7   :  { %v1150_v34 = vsel %vm1086_vm4, 1, %v1604_v14  ;;  %v384_v35 = vpop.xlane.xlu1 %383  ;;  %v382_v36 = vpop.xlane.xlu0 %381  ;;  %v951_v59 = vcvt.s32.f32 %v949_v40  ;;  %v794_v63 = vshrl.u32 %v2120_v54, 16  ;;  %v2138_v11 = vsel %vm245_vm0, %v238_v5, 0 }
  0xc8   :  { %v1265_v41 = vrot.slane %v1150_v34, %v2018_v7  ;;  %v375_v39 = vadd.s32 %v374_v25, %v372_v27  ;;  %v386_v45 = vcvt.f32.s32 %v384_v35  ;;  %v385_v47 = vcvt.f32.s32 %v382_v36 }
  0xc9   :  { %v978_v62 = vcvt.s32.f32 %v976_v30  ;;  %v224_v56 = vsel %vm160_vm8, 1, %v1604_v14  ;;  %vm175_vm3 = vcmp.ne.s32.totalorder %v71_v49, %v1894_v42  ;;  %v975_v23 = vand.u32 65535, %v2104_v18 }
  0xca   :  { %v1267_v46 = vsel %vm1266_vm10, %v1265_v41, %v1260_v24  ;;  %vm1087_vm12 = vcmp.eq.s32.totalorder %v375_v39, 0  ;;  %v387_v57 = vshll.u32 %v386_v45, 16  ;;  %940 = vadd.xlane.f32.xlu1 %v938_v50  ;;  %773 = vadd.xlane.f32.xlu0 %v770_v17  ;;  %v1296_v24 = vadd.s32 4294967192, %v1897_v43  ;;  %v72_v41 = vld [vmem:[%s2485_s1 + $0x1d8] sm:$0xff] }
  0xcb   :  { %v1151_v6 = vsel %vm1087_vm12, 1, %v1604_v14  ;;  %v397_v0 = vpop.xlane.xlu1 %396  ;;  %v395_v53 = vpop.xlane.xlu0 %394  ;;  %vm1294_vm12 = vcmask 851712   ;;  %v769_v25 = vcvt.s32.f32 %v767_v1  ;;  %v989_v35 = vshrl.u32 %v2138_v11, 16 }
  0xcc   :  { %v1272_v60 = vrot.slane %v1151_v6, %v2039_v4  ;;  %v388_v61 = vadd.s32 %v387_v57, %v385_v47  ;;  %v399_v50 = vcvt.f32.s32 %v397_v0  ;;  %v398_v19 = vcvt.f32.s32 %v395_v53 }
  0xcd   :  { %v796_v36 = vcvt.s32.f32 %v794_v63  ;;  %v239_v26 = vsel %vm175_vm3, 1, %v1604_v14  ;;  %vm161_vm8 = vcmp.ne.s32.totalorder %v57_v20, %v1844_v51  ;;  %v2168_v30 = vsub.s32 %v1296_v24, %v1622_v3 }
  0xce   :  { %v1274_v58 = vsel %vm1273_vm1, %v1272_v60, %v1267_v46  ;;  %vm1088_vm4 = vcmp.eq.s32.totalorder %v388_v61, 0  ;;  %v400_v15 = vshll.u32 %v399_v50, 16  ;;  %786 = vadd.xlane.f32.xlu1 %v783_v2  ;;  %968 = vadd.xlane.f32.xlu0 %v965_v44  ;;  %v2156_v2 = vsel %vm245_vm0, %v224_v56, 0  ;;  %v58_v50 = vld [vmem:[%s2485_s1 + $0x168] sm:$0xff] }
  0xcf   :  { %v1152_v55 = vsel %vm1088_vm4, 1, %v1604_v14  ;;  %v410_v17 = vpop.xlane.xlu1 %409  ;;  %v408_v21 = vpop.xlane.xlu0 %407  ;;  %vm2488_vm3 = vcmask 917312   ;;  %v1303_v5 = vadd.s32 4294967184, %v1897_v43  ;;  %v964_v46 = vcvt.s32.f32 %v962_v52 }
  0xd0   :  { %v1279_v27 = vrot.slane %v1152_v55, %v2057_v32  ;;  %v401_v29 = vadd.s32 %v400_v15, %v398_v19  ;;  %v412_v34 = vcvt.f32.s32 %v410_v17  ;;  %v411_v1 = vcvt.f32.s32 %v408_v21 }
  0xd1   :  { %v991_v6 = vcvt.s32.f32 %v989_v35  ;;  %v807_v0 = vshrl.u32 %v2156_v2, 16  ;;  %v2174_v53 = vsel %vm245_vm0, %v239_v26, 0  ;;  %v2186_v56 = vsub.s32 %v1303_v5, %v1622_v3 }
  0xd2   :  { %v1281_v40 = vsel %vm2487_vm7, %v1279_v27, %v1274_v58  ;;  %vm1089_vm4 = vcmp.eq.s32.totalorder %v401_v29, 0  ;;  %v413_v38 = vshll.u32 %v412_v34, 16  ;;  %981 = vadd.xlane.f32.xlu1 %v978_v62  ;;  %953 = vadd.xlane.f32.xlu0 %v951_v59  ;;  %v225_v59 = vsel %vm161_vm8, 1, %v1604_v14  ;;  %v73_v29 = vld [vmem:[%s2485_s1 + $0x1e0] sm:$0xff] }
  0xd3   :  { %v1153_v39 = vsel %vm1089_vm4, 1, %v1604_v14  ;;  %v423_v45 = vpop.xlane.xlu1 %422  ;;  %v421_v44 = vpop.xlane.xlu0 %420  ;;  %vm176_vm4 = vcmp.ne.s32.totalorder %v72_v41, %v1894_v42  ;;  %v1310_v15 = vadd.s32 4294967176, %v1897_v43  ;;  %v782_v19 = vcvt.s32.f32 %v780_v12 }
  0xd4   :  { %v1286_v57 = vrot.slane %v1153_v39, %v2083_v9  ;;  %v414_v47 = vadd.s32 %v413_v38, %v411_v1  ;;  %v425_v49 = vcvt.f32.s32 %v423_v45  ;;  %v424_v61 = vcvt.f32.s32 %v421_v44 }
  0xd5   :  { %v2193_v21 = vsel %vm245_vm0, %v225_v59, 0  ;;  %v809_v24 = vcvt.s32.f32 %v807_v0  ;;  %v240_v27 = vsel %vm176_vm4, 1, %v1604_v14  ;;  %v793_v38 = vand.u32 65535, %v2120_v54 }
  0xd6   :  { %v1288_v60 = vsel %vm1287_vm13, %v1286_v57, %v1281_v40  ;;  %vm1090_vm7 = vcmp.eq.s32.totalorder %v414_v47, 0  ;;  %v426_v52 = vshll.u32 %v425_v49, 16  ;;  %799 = vadd.xlane.f32.xlu1 %v796_v36  ;;  %771 = vadd.xlane.f32.xlu0 %v769_v25  ;;  %v1002_v25 = vshrl.u32 %v2174_v53, 16 }
  0xd7   :  { %v1154_v62 = vsel %vm1090_vm7, 1, %v1604_v14  ;;  %v436_v63 = vpop.xlane.xlu1 %435  ;;  %v434_v58 = vpop.xlane.xlu0 %433  ;;  %vm162_vm7 = vcmp.ne.s32.totalorder %v58_v50, %v1844_v51  ;;  %v2206_v36 = vsub.s32 %v1310_v15, %v1622_v3  ;;  %v977_v40 = vcvt.s32.f32 %v975_v23  ;;  %v74_v15 = vld [vmem:[%s2485_s1 + $0x1e8] sm:$0xff] }
  0xd8   :  { %v1293_v20 = vrot.slane %v1154_v62, %v2133_v13  ;;  %v427_v55 = vadd.s32 %v426_v52, %v424_v61  ;;  %v438_v17 = vcvt.f32.s32 %v436_v63  ;;  %v437_v12 = vcvt.f32.s32 %v434_v58 }
  0xd9   :  { %v820_v45 = vshrl.u32 %v2193_v21, 16  ;;  %v1004_v44 = vcvt.s32.f32 %v1002_v25  ;;  %v2214_v5 = vsel %vm245_vm0, %v240_v27, 0  ;;  %v226_v3 = vsel %vm162_vm7, 1, %v1604_v14 }
  0xda   :  { %v1295_v43 = vsel %vm1294_vm12, %v1293_v20, %v1288_v60  ;;  %vm1091_vm8 = vcmp.eq.s32.totalorder %v427_v55, 0  ;;  %v439_v48 = vshll.u32 %v438_v17, 16  ;;  %994 = vadd.xlane.f32.xlu1 %v991_v6  ;;  %966 = vadd.xlane.f32.xlu0 %v964_v46  ;;  %vm177_vm4 = vcmp.ne.s32.totalorder %v73_v29, %v1894_v42  ;;  %v59_v46 = vld [vmem:[%s2485_s1 + $0x170] sm:$0xff] }
  0xdb   :  { %v1155_v34 = vsel %vm1091_vm8, 1, %v1604_v14  ;;  %v449_v35 = vpop.xlane.xlu1 %448  ;;  %v447_v26 = vpop.xlane.xlu0 %446  ;;  %v795_v6 = vcvt.s32.f32 %v793_v38  ;;  %v988_v0 = vand.u32 65535, %v2138_v11  ;;  %vm2489_vm7 = vcmask 982912  }
  0xdc   :  { %v1300_v1 = vrot.slane %v1155_v34, %v2168_v30  ;;  %v440_v41 = vadd.s32 %v439_v48, %v437_v12  ;;  %v451_v39 = vcvt.f32.s32 %v449_v35  ;;  %v450_v23 = vcvt.f32.s32 %v447_v26 }
  0xdd   :  { %v822_v61 = vcvt.s32.f32 %v820_v45  ;;  %v1015_v50 = vshrl.u32 %v2214_v5, 16  ;;  %v2229_v62 = vsel %vm245_vm0, %v226_v3, 0  ;;  %v241_v63 = vsel %vm177_vm4, 1, %v1604_v14  ;;  %v60_v45 = vld [vmem:[%s2485_s1 + $0x178] sm:$0xff] }
  0xde   :  { %v1302_v18 = vsel %vm2488_vm3, %v1300_v1, %v1295_v43  ;;  %vm1092_vm8 = vcmp.eq.s32.totalorder %v440_v41, 0  ;;  %v452_v54 = vshll.u32 %v451_v39, 16  ;;  %812 = vadd.xlane.f32.xlu1 %v809_v24  ;;  %784 = vadd.xlane.f32.xlu0 %v782_v19  ;;  %v990_v24 = vcvt.s32.f32 %v988_v0 }
  0xdf   :  { %v1156_v57 = vsel %vm1092_vm8, 1, %v1604_v14  ;;  %v462_v47 = vpop.xlane.xlu1 %461  ;;  %v460_v49 = vpop.xlane.xlu0 %459  ;;  %vm163_vm8 = vcmp.ne.s32.totalorder %v59_v46, %v1844_v51  ;;  %v806_v25 = vand.u32 65535, %v2156_v2  ;;  %vm2490_vm4 = vcmask 1048512  }
  0xe0   :  { %v1307_v59 = vrot.slane %v1156_v57, %v2186_v56  ;;  %v453_v60 = vadd.s32 %v452_v54, %v450_v23  ;;  %v464_v52 = vcvt.f32.s32 %v462_v47  ;;  %v463_v11 = vcvt.f32.s32 %v460_v49  ;;  %v75_v49 = vld [vmem:[%s2485_s1 + $0x1f0] sm:$0xff] }
  0xe1   :  { %v2243_v12 = vsel %vm245_vm0, %v241_v63, 0  ;;  %v1017_v29 = vcvt.s32.f32 %v1015_v50  ;;  %v833_v34 = vshrl.u32 %v2229_v62, 16  ;;  %v227_v35 = vsel %vm163_vm8, 1, %v1604_v14 }
  0xe2   :  { %vm1093_vm3 = vcmp.eq.s32.totalorder %v453_v60, 0  ;;  %v465_v58 = vshll.u32 %v464_v52, 16  ;;  %1007 = vadd.xlane.f32.xlu1 %v1004_v44  ;;  %979 = vadd.xlane.f32.xlu0 %v977_v40  ;;  %v1309_v19 = vsel %vm2489_vm7, %v1307_v59, %v1302_v18  ;;  %v1028_v41 = vshrl.u32 %v2243_v12, 16 }
  0xe3   :  { %v1157_v20 = vsel %vm1093_vm3, 1, %v1604_v14  ;;  %v475_v55 = vpop.xlane.xlu1 %474  ;;  %v473_v17 = vpop.xlane.xlu0 %472  ;;  %vm178_vm3 = vcmp.ne.s32.totalorder %v74_v15, %v1894_v42  ;;  %v1001_v39 = vand.u32 65535, %v2174_v53  ;;  %v808_v18 = vcvt.s32.f32 %v806_v25 }
  0xe4   :  { %v1314_v27 = vrot.slane %v1157_v20, %v2206_v36  ;;  %v466_v43 = vadd.s32 %v465_v58, %v463_v11  ;;  %v477_v48 = vcvt.f32.s32 %v475_v55  ;;  %v476_v2 = vcvt.f32.s32 %v473_v17 }
  0xe5   :  { %v835_v23 = vcvt.s32.f32 %v833_v34  ;;  %v2260_v46 = vsel %vm245_vm0, %v227_v35, 0  ;;  %v242_v57 = vsel %vm178_vm3, 1, %v1604_v14  ;;  %v1030_v60 = vcvt.s32.f32 %v1028_v41 }
  0xe6   :  { %vm1094_vm7 = vcmp.eq.s32.totalorder %v466_v43, 0  ;;  %v478_v26 = vshll.u32 %v477_v48, 16  ;;  %825 = vadd.xlane.f32.xlu1 %v822_v61  ;;  %797 = vadd.xlane.f32.xlu0 %v795_v6  ;;  %v2251_v40 = vsel %vm2490_vm4, %v1314_v27, %v1309_v19  ;;  %vm164_vm4 = vcmp.ne.s32.totalorder %v60_v45, %v1844_v51 }
  0xe7   :  { %v488_v38 = vpop.xlane.xlu1 %487  ;;  %v486_v1 = vpop.xlane.xlu0 %485  ;;  %v1158_v54 = vsel %vm1094_vm7, 1, %v1604_v14  ;;  %v1003_v52 = vcvt.s32.f32 %v1001_v39  ;;  %v819_v61 = vand.u32 65535, %v2193_v21  ;;  %v846_v51 = vshrl.u32 %v2260_v46, 16  ;;  %v76_v39 = vld [vmem:[%s2485_s1 + $0x1f8] sm:$0xff]  ;;  %s1605_s1 = smov [#allocation2]  }
  0xe8   :  { %v479_v44 = vadd.s32 %v478_v26, %v476_v2  ;;  %v490_v3 = vcvt.f32.s32 %v488_v38  ;;  %v489_v53 = vcvt.f32.s32 %v486_v1  ;;  %v1320_v50 = vrot.slane %v1158_v54, %v1931_v10  ;;  %s1567_s22 = sshll.u32 %s1605_s1, 4  ;;  %s1568_s22 = int_to_ptr.vmem [resolvable:$true] %s1567_s22 }
  0xe9   :  { %v2275_v15 = vsel %vm245_vm0, %v242_v57, 0  ;;  %v228_v19 = vsel %vm164_vm4, 1, %v1604_v14  ;;  %vm179_vm7 = vcmp.ne.s32.totalorder %v75_v49, %v1894_v42  ;;  %v1014_v27 = vand.u32 65535, %v2214_v5  ;;  %s1579_s23 = scalar_lea.vmem %s1568_s22, 64  ;;  %p1584_p1 = scmp.lt.s32.totalorder %s1568_s22, %s1568_s22 }
  0xea   :  { %vm1095_vm8 = vcmp.eq.s32.totalorder %v479_v44, 0  ;;  %v491_v47 = vshll.u32 %v490_v3, 16  ;;  %1020 = vadd.xlane.f32.xlu1 %v1017_v29  ;;  %992 = vadd.xlane.f32.xlu0 %v990_v24  ;;  %v821_v34 = vcvt.s32.f32 %v819_v61  ;;  %v848_v35 = vcvt.s32.f32 %v846_v51  ;;  %p1580_p0 = scmp.ne.s32.totalorder %s1568_s22, %s1579_s23  ;;  %p1585_p2 = scmp.lt.s32.totalorder %s1579_s23, %s1579_s23 }
  0xeb   :  { %v1159_v6 = vsel %vm1095_vm8, 1, %v1604_v14  ;;  %v501_v0 = vpop.xlane.xlu1 %500  ;;  %v499_v59 = vpop.xlane.xlu0 %498  ;;  %v1041_v26 = vshrl.u32 %v2275_v15, 16  ;;  %v2285_v2 = vsel %vm245_vm0, %v228_v19, 0  ;;  %v243_v38 = vsel %vm179_vm7, 1, %v1604_v14 }
  0xec   :  { %v1324_v63 = vrot.slane %v1159_v6, %v1927_v8  ;;  %v492_v58 = vadd.s32 %v491_v47, %v489_v53  ;;  %v503_v11 = vcvt.f32.s32 %v501_v0  ;;  %v502_v21 = vcvt.f32.s32 %v499_v59  ;;  %p1586_p3 = por %p1585_p2, %p1584_p1 }
  0xed   :  { %v832_v47 = vand.u32 65535, %v2229_v62  ;;  %v1043_v53 = vcvt.s32.f32 %v1041_v26  ;;  %v859_v49 = vshrl.u32 %v2285_v2, 16  ;;  %v2299_v6 = vsel %vm245_vm0, %v243_v38, 0 }
  0xee   :  { %v1325_v20 = vsel %vm1217_vm15, %v1324_v63, %v1320_v50  ;;  %vm1096_vm3 = vcmp.eq.s32.totalorder %v492_v58, 0  ;;  %v504_v55 = vshll.u32 %v503_v11, 16  ;;  %838 = vadd.xlane.f32.xlu1 %v835_v23  ;;  %810 = vadd.xlane.f32.xlu0 %v808_v18  ;;  %v1016_v18 = vcvt.s32.f32 %v1014_v27  ;;  %p1587_p4 = pnand %p1586_p3, %p1580_p0 }
  0xef   :  { %v1160_v17 = vsel %vm1096_vm3, 1, %v1604_v14  ;;  %v514_v24 = vpop.xlane.xlu1 %513  ;;  %v512_v25 = vpop.xlane.xlu0 %511  ;;  %vm180_vm8 = vcmp.ne.s32.totalorder %v76_v39, %v1894_v42  ;;  %v1027_v11 = vand.u32 65535, %v2243_v12  ;;  %v861_v51 = vcvt.s32.f32 %v859_v49 }
  0xf0   :  { %v1329_v43 = vrot.slane %v1160_v17, %v1939_v16  ;;  %v505_v48 = vadd.s32 %v504_v55, %v502_v21  ;;  %v516_v29 = vcvt.f32.s32 %v514_v24  ;;  %v515_v5 = vcvt.f32.s32 %v512_v25 }
  0xf1   :  { %v834_v19 = vcvt.s32.f32 %v832_v47  ;;  %v244_v55 = vsel %vm180_vm8, 1, %v1604_v14  ;;  %v1040_v42 = vand.u32 65535, %v2275_v15  ;;  %v845_v26 = vand.u32 65535, %v2260_v46 }
  0xf2   :  { %v1330_v1 = vsel %vm1224_vm2, %v1329_v43, %v1325_v20  ;;  %vm1097_vm4 = vcmp.eq.s32.totalorder %v505_v48, 0  ;;  %v517_v41 = vshll.u32 %v516_v29, 16  ;;  %1033 = vadd.xlane.f32.xlu1 %v1030_v60  ;;  %1005 = vadd.xlane.f32.xlu0 %v1003_v52  ;;  %v1054_v20 = vshrl.u32 %v2299_v6, 16 }
  0xf3   :  { %v1161_v45 = vsel %vm1097_vm4, 1, %v1604_v14  ;;  %v527_v44 = vpop.xlane.xlu1 %526  ;;  %v525_v3 = vpop.xlane.xlu0 %524  ;;  %v1065_v38 = vsel %vm245_vm0, %v244_v55, 0  ;;  %v1042_v15 = vcvt.s32.f32 %v1040_v42  ;;  %v858_v46 = vand.u32 65535, %v2285_v2 }
  0xf4   :  { %v1334_v54 = vrot.slane %v1161_v45, %v1947_v22  ;;  %v518_v23 = vadd.s32 %v517_v41, %v515_v5  ;;  %v529_v57 = vcvt.f32.s32 %v527_v44  ;;  %v528_v60 = vcvt.f32.s32 %v525_v3 }
  0xf5   :  { %v1053_v2 = vand.u32 65535, %v2299_v6 }
  0xf6   :  { %v1335_v0 = vsel %vm1231_vm6, %v1334_v54, %v1330_v1  ;;  %vm1098_vm7 = vcmp.eq.s32.totalorder %v518_v23, 0  ;;  %v530_v59 = vshll.u32 %v529_v57, 16  ;;  %851 = vadd.xlane.f32.xlu1 %v848_v35  ;;  %823 = vadd.xlane.f32.xlu0 %v821_v34  ;;  %v1029_v34 = vcvt.s32.f32 %v1027_v11 }
  0xf7   :  { %v1162_v52 = vsel %vm1098_vm7, 1, %v1604_v14  ;;  %v540_v61 = vpop.xlane.xlu1 %539  ;;  %v538_v50 = vpop.xlane.xlu0 %537  ;;  %v1056_v35 = vcvt.s32.f32 %v1054_v20  ;;  %v847_v23 = vcvt.s32.f32 %v845_v26  ;;  %v1067_v57 = vshrl.u32 %v1065_v38, 16 }
  0xf8   :  { %v1339_v62 = vrot.slane %v1162_v52, %v1958_v31  ;;  %v531_v63 = vadd.s32 %v530_v59, %v528_v60  ;;  %v542_v58 = vcvt.f32.s32 %v540_v61  ;;  %v541_v24 = vcvt.f32.s32 %v538_v50 }
  0xfa   :  { %v1340_v21 = vsel %vm1238_vm9, %v1339_v62, %v1335_v0  ;;  %vm1099_vm3 = vcmp.eq.s32.totalorder %v531_v63, 0  ;;  %v543_v17 = vshll.u32 %v542_v58, 16  ;;  %1046 = vadd.xlane.f32.xlu1 %v1043_v53  ;;  %1018 = vadd.xlane.f32.xlu0 %v1016_v18  ;;  %v860_v62 = vcvt.s32.f32 %v858_v46 }
  0xfb   :  { %v1163_v25 = vsel %vm1099_vm3, 1, %v1604_v14  ;;  %v553_v27 = vpop.xlane.xlu1 %552  ;;  %v551_v43 = vpop.xlane.xlu0 %550  ;;  %v1069_v63 = vcvt.s32.f32 %v1067_v57  ;;  %v1066_v58 = vand.u32 65535, %v1065_v38 }
  0xfc   :  { %v1344_v12 = vrot.slane %v1163_v25, %v1961_v33  ;;  %v544_v48 = vadd.s32 %v543_v17, %v541_v24  ;;  %v555_v29 = vcvt.f32.s32 %v553_v27  ;;  %v554_v5 = vcvt.f32.s32 %v551_v43 }
  0xfd   :  { %v1068_v27 = vcvt.s32.f32 %v1066_v58  ;;  %v1055_v43 = vcvt.s32.f32 %v1053_v2 }
  0xfe   :  { %v1345_v1 = vsel %vm1245_vm11, %v1344_v12, %v1340_v21  ;;  %vm1100_vm4 = vcmp.eq.s32.totalorder %v544_v48, 0  ;;  %v556_v41 = vshll.u32 %v555_v29, 16  ;;  %864 = vadd.xlane.f32.xlu1 %v861_v51  ;;  %836 = vadd.xlane.f32.xlu0 %v834_v19 }
  0xff   :  { %v1164_v39 = vsel %vm1100_vm4, 1, %v1604_v14  ;;  %v566_v45 = vpop.xlane.xlu1 %565  ;;  %v564_v44 = vpop.xlane.xlu0 %563  ;;  %vm2491_vm4 = vcmask 720512  }
 0x100   :  { %v1349_v3 = vrot.slane %v1164_v39, %v1964_v37  ;;  %v557_v18 = vadd.s32 %v556_v41, %v554_v5  ;;  %v568_v54 = vcvt.f32.s32 %v566_v45  ;;  %v567_v49 = vcvt.f32.s32 %v564_v44 }
 0x102   :  { %v1350_v47 = vsel %vm1252_vm14, %v1349_v3, %v1345_v1  ;;  %vm1101_vm0 = vcmp.eq.s32.totalorder %v557_v18, 0  ;;  %v569_v53 = vshll.u32 %v568_v54, 16  ;;  %1059 = vadd.xlane.f32.xlu1 %v1056_v35  ;;  %1031 = vadd.xlane.f32.xlu0 %v1029_v34 }
 0x103   :  { %v1165_v0 = vsel %vm1101_vm0, 1, %v1604_v14  ;;  %v579_v59 = vpop.xlane.xlu1 %578  ;;  %v577_v60 = vpop.xlane.xlu0 %576 }
 0x104   :  { %v1354_v52 = vrot.slane %v1165_v0, %v2000_v28  ;;  %v570_v61 = vadd.s32 %v569_v53, %v567_v49  ;;  %v581_v50 = vcvt.f32.s32 %v579_v59  ;;  %v580_v19 = vcvt.f32.s32 %v577_v60 }
 0x106   :  { %v1355_v11 = vsel %vm1259_vm5, %v1354_v52, %v1350_v47  ;;  %vm1102_vm8 = vcmp.eq.s32.totalorder %v570_v61, 0  ;;  %v582_v51 = vshll.u32 %v581_v50, 16  ;;  %1044 = vadd.xlane.f32.xlu1 %v1042_v15  ;;  %849 = vadd.xlane.f32.xlu0 %v847_v23 }
 0x107   :  { %v1166_v20 = vsel %vm1102_vm8, 1, %v1604_v14  ;;  %v592_v55 = vpop.xlane.xlu1 %591  ;;  %v590_v21 = vpop.xlane.xlu0 %589 }
 0x108   :  { %v1359_v17 = vrot.slane %v1166_v20, %v2018_v7  ;;  %v583_v24 = vadd.s32 %v582_v51, %v580_v19  ;;  %v594_v25 = vcvt.f32.s32 %v592_v55  ;;  %v593_v48 = vcvt.f32.s32 %v590_v21 }
 0x10a   :  { %v1360_v12 = vsel %vm1266_vm10, %v1359_v17, %v1355_v11  ;;  %vm1103_vm7 = vcmp.eq.s32.totalorder %v583_v24, 0  ;;  %v595_v6 = vshll.u32 %v594_v25, 16  ;;  %862 = vadd.xlane.f32.xlu1 %v860_v62  ;;  %1072 = vadd.xlane.f32.xlu0 %v1069_v63 }
 0x10b   :  { %v1167_v29 = vsel %vm1103_vm7, 1, %v1604_v14  ;;  %v605_v34 = vpop.xlane.xlu1 %604  ;;  %v603_v35 = vpop.xlane.xlu0 %602 }
 0x10c   :  { %v1364_v42 = vrot.slane %v1167_v29, %v2039_v4  ;;  %v596_v26 = vadd.s32 %v595_v6, %v593_v48  ;;  %v607_v38 = vcvt.f32.s32 %v605_v34  ;;  %v606_v5 = vcvt.f32.s32 %v603_v35 }
 0x10e   :  { %v1365_v1 = vsel %vm1273_vm1, %v1364_v42, %v1360_v12  ;;  %vm1104_vm3 = vcmp.eq.s32.totalorder %v596_v26, 0  ;;  %v608_v41 = vshll.u32 %v607_v38, 16  ;;  %1070 = vadd.xlane.f32.xlu1 %v1068_v27  ;;  %1057 = vadd.xlane.f32.xlu0 %v1055_v43 }
 0x10f   :  { %v1168_v39 = vsel %vm1104_vm3, 1, %v1604_v14  ;;  %v618_v45 = vpop.xlane.xlu1 %617  ;;  %v616_v44 = vpop.xlane.xlu0 %615  ;;  %vm2492_vm3 = vcmask 917312  }
 0x110   :  { %v1369_v3 = vrot.slane %v1168_v39, %v2057_v32  ;;  %v609_v18 = vadd.s32 %v608_v41, %v606_v5  ;;  %v620_v54 = vcvt.f32.s32 %v618_v45  ;;  %v619_v46 = vcvt.f32.s32 %v616_v44 }
 0x112   :  { %v1370_v15 = vsel %vm2491_vm4, %v1369_v3, %v1365_v1  ;;  %vm1105_vm0 = vcmp.eq.s32.totalorder %v609_v18, 0  ;;  %v621_v23 = vshll.u32 %v620_v54, 16 }
 0x113   :  { %v1169_v57 = vsel %vm1105_vm0, 1, %v1604_v14  ;;  %v631_v47 = vpop.xlane.xlu1 %630  ;;  %v629_v53 = vpop.xlane.xlu0 %628  ;;  %vm2493_vm0 = vcmask 982912  }
 0x114   :  { %v1374_v49 = vrot.slane %v1169_v57, %v2083_v9  ;;  %v622_v0 = vadd.s32 %v621_v23, %v619_v46  ;;  %v633_v59 = vcvt.f32.s32 %v631_v47  ;;  %v632_v61 = vcvt.f32.s32 %v629_v53 }
 0x116   :  { %v1375_v60 = vsel %vm1287_vm13, %v1374_v49, %v1370_v15  ;;  %vm1106_vm8 = vcmp.eq.s32.totalorder %v622_v0, 0  ;;  %v634_v52 = vshll.u32 %v633_v59, 16 }
 0x117   :  { %v1170_v50 = vsel %vm1106_vm8, 1, %v1604_v14  ;;  %v644_v62 = vpop.xlane.xlu1 %643  ;;  %v642_v63 = vpop.xlane.xlu0 %641 }
 0x118   :  { %v1379_v58 = vrot.slane %v1170_v50, %v2133_v13  ;;  %v635_v2 = vadd.s32 %v634_v52, %v632_v61  ;;  %v646_v11 = vcvt.f32.s32 %v644_v62  ;;  %v645_v20 = vcvt.f32.s32 %v642_v63 }
 0x11a   :  { %v1380_v51 = vsel %vm1294_vm12, %v1379_v58, %v1375_v60  ;;  %vm1107_vm7 = vcmp.eq.s32.totalorder %v635_v2, 0  ;;  %v647_v19 = vshll.u32 %v646_v11, 16 }
 0x11b   :  { %v1171_v55 = vsel %vm1107_vm7, 1, %v1604_v14  ;;  %v657_v21 = vpop.xlane.xlu1 %656  ;;  %v655_v17 = vpop.xlane.xlu0 %654  ;;  %vm1554_vm7 = vcmask 1041409  }
 0x11c   :  { %v1384_v24 = vrot.slane %v1171_v55, %v2168_v30  ;;  %v648_v25 = vadd.s32 %v647_v19, %v645_v20  ;;  %v659_v27 = vcvt.f32.s32 %v657_v21  ;;  %v658_v6 = vcvt.f32.s32 %v655_v17 }
 0x11e   :  { %v1385_v43 = vsel %vm2492_vm3, %v1384_v24, %v1380_v51  ;;  %vm1108_vm4 = vcmp.eq.s32.totalorder %v648_v25, 0  ;;  %v660_v12 = vshll.u32 %v659_v27, 16 }
 0x11f   :  { %v1172_v48 = vsel %vm1108_vm4, 1, %v1604_v14  ;;  %v670_v29 = vpop.xlane.xlu1 %669  ;;  %v668_v34 = vpop.xlane.xlu0 %667  ;;  %vm2494_vm4 = vcmask 1048512  }
 0x120   :  { %v1389_v35 = vrot.slane %v1172_v48, %v2186_v56  ;;  %v661_v42 = vadd.s32 %v660_v12, %v658_v6  ;;  %v672_v26 = vcvt.f32.s32 %v670_v29  ;;  %v671_v41 = vcvt.f32.s32 %v668_v34 }
 0x122   :  { %v1390_v38 = vsel %vm2493_vm0, %v1389_v35, %v1385_v43  ;;  %vm1109_vm8 = vcmp.eq.s32.totalorder %v661_v42, 0  ;;  %v673_v1 = vshll.u32 %v672_v26, 16 }
 0x123   :  { %v1173_v5 = vsel %vm1109_vm8, 1, %v1604_v14  ;;  %v683_v39 = vpop.xlane.xlu1 %682  ;;  %v681_v45 = vpop.xlane.xlu0 %680 }
 0x124   :  { %v1394_v44 = vrot.slane %v1173_v5, %v2206_v36  ;;  %v674_v3 = vadd.s32 %v673_v1, %v671_v41  ;;  %v685_v18 = vcvt.f32.s32 %v683_v39  ;;  %v684_v15 = vcvt.f32.s32 %v681_v45 }
 0x126   :  { %vm1110_vm3 = vcmp.eq.s32.totalorder %v674_v3, 0  ;;  %v686_v54 = vshll.u32 %v685_v18, 16  ;;  %v1395_v23 = vsel %vm2494_vm4, %v1394_v44, %v1390_v38 }
 0x127   :  { %v696_v46 = vpop.xlane.xlu1 %695  ;;  %v694_v57 = vpop.xlane.xlu0 %693  ;;  %v2350_v47 = vsel %vm1554_vm7, %v1395_v23, %v2251_v40  ;;  %v1174_v0 = vsel %vm1110_vm3, 1, %v1604_v14 }
 0x128   :  { %v687_v53 = vadd.s32 %v686_v54, %v684_v15  ;;  %v698_v49 = vcvt.f32.s32 %v696_v46  ;;  %v697_v60 = vcvt.f32.s32 %v694_v57  ;;  %v1399_v62 = vrot.slane %v1174_v0, %v1931_v10 }
 0x12a   :  { %vm1111_vm0 = vcmp.eq.s32.totalorder %v687_v53, 0  ;;  %v699_v59 = vshll.u32 %v698_v49, 16 }
 0x12b   :  { %v1175_v52 = vsel %vm1111_vm0, 1, %v1604_v14  ;;  %v709_v61 = vpop.xlane.xlu1 %708  ;;  %v707_v50 = vpop.xlane.xlu0 %706 }
 0x12c   :  { %v1403_v63 = vrot.slane %v1175_v52, %v1927_v8  ;;  %v700_v58 = vadd.s32 %v699_v59, %v697_v60  ;;  %v711_v2 = vcvt.f32.s32 %v709_v61  ;;  %v710_v51 = vcvt.f32.s32 %v707_v50 }
 0x12e   :  { %v1404_v40 = vsel %vm1217_vm15, %v1403_v63, %v1399_v62  ;;  %vm1112_vm8 = vcmp.eq.s32.totalorder %v700_v58, 0  ;;  %v712_v11 = vshll.u32 %v711_v2, 16 }
 0x12f   :  { %v1176_v19 = vsel %vm1112_vm8, 1, %v1604_v14  ;;  %v722_v20 = vpop.xlane.xlu1 %721  ;;  %v720_v55 = vpop.xlane.xlu0 %719 }
 0x130   :  { %v1408_v21 = vrot.slane %v1176_v19, %v1939_v16  ;;  %v713_v17 = vadd.s32 %v712_v11, %v710_v51  ;;  %v724_v24 = vcvt.f32.s32 %v722_v20  ;;  %v723_v43 = vcvt.f32.s32 %v720_v55 }
 0x132   :  { %v1409_v25 = vsel %vm1224_vm2, %v1408_v21, %v1404_v40  ;;  %vm1113_vm7 = vcmp.eq.s32.totalorder %v713_v17, 0  ;;  %v725_v27 = vshll.u32 %v724_v24, 16 }
 0x133   :  { %v1177_v12 = vsel %vm1113_vm7, 1, %v1604_v14  ;;  %v735_v6 = vpop.xlane.xlu1 %734  ;;  %v733_v48 = vpop.xlane.xlu0 %732 }
 0x134   :  { %v1413_v29 = vrot.slane %v1177_v12, %v1947_v22  ;;  %v726_v34 = vadd.s32 %v725_v27, %v723_v43  ;;  %v737_v35 = vcvt.f32.s32 %v735_v6  ;;  %v736_v38 = vcvt.f32.s32 %v733_v48 }
 0x136   :  { %v1414_v42 = vsel %vm1231_vm6, %v1413_v29, %v1409_v25  ;;  %vm1114_vm3 = vcmp.eq.s32.totalorder %v726_v34, 0  ;;  %v738_v26 = vshll.u32 %v737_v35, 16 }
 0x137   :  { %v1178_v1 = vsel %vm1114_vm3, 1, %v1604_v14  ;;  %v748_v41 = vpop.xlane.xlu1 %747  ;;  %v746_v5 = vpop.xlane.xlu0 %745 }
 0x138   :  { %v1418_v39 = vrot.slane %v1178_v1, %v1958_v31  ;;  %v739_v45 = vadd.s32 %v738_v26, %v736_v38  ;;  %v750_v44 = vcvt.f32.s32 %v748_v41  ;;  %v749_v54 = vcvt.f32.s32 %v746_v5 }
 0x13a   :  { %v1419_v3 = vsel %vm1238_vm9, %v1418_v39, %v1414_v42  ;;  %vm1115_vm4 = vcmp.eq.s32.totalorder %v739_v45, 0  ;;  %v751_v18 = vshll.u32 %v750_v44, 16 }
 0x13b   :  { %v1179_v15 = vsel %vm1115_vm4, 1, %v1604_v14  ;;  %v759_v23 = vpop.xlane.xlu0 %758  ;;  %v878_v46 = vpop.xlane.xlu1 %877 }
 0x13c   :  { %v1423_v57 = vrot.slane %v1179_v15, %v1961_v33  ;;  %v752_v53 = vadd.s32 %v751_v18, %v749_v54  ;;  %v880_v61 = vcvt.f32.s32 %v878_v46  ;;  %v762_v18 = vcvt.f32.s32 %v759_v23 }
 0x13e   :  { %v1424_v49 = vsel %vm1245_vm11, %v1423_v57, %v1419_v3  ;;  %vm1116_vm0 = vcmp.eq.s32.totalorder %v752_v53, 0  ;;  %v881_v40 = vshll.u32 %v880_v61, 16 }
 0x13f   :  { %v1180_v0 = vsel %vm1116_vm0, 1, %v1604_v14  ;;  %v891_v59 = vpop.xlane.xlu0 %890  ;;  %v904_v60 = vpop.xlane.xlu1 %903 }
 0x140   :  { %v1428_v52 = vrot.slane %v1180_v0, %v1964_v37  ;;  %v893_v50 = vcvt.f32.s32 %v891_v59  ;;  %v906_v63 = vcvt.f32.s32 %v904_v60 }
 0x142   :  { %v1429_v62 = vsel %vm1252_vm14, %v1428_v52, %v1424_v49  ;;  %v894_v11 = vshll.u32 %v893_v50, 16  ;;  %v907_v21 = vshll.u32 %v906_v63, 16 }
 0x143   :  { %v889_v58 = vpop.xlane.xlu1 %888  ;;  %v876_v2 = vpop.xlane.xlu0 %875 }
 0x144   :  { %v892_v51 = vcvt.f32.s32 %v889_v58  ;;  %v879_v19 = vcvt.f32.s32 %v876_v2 }
 0x146   :  { %v895_v20 = vadd.s32 %v894_v11, %v892_v51  ;;  %v882_v55 = vadd.s32 %v881_v40, %v879_v19 }
 0x147   :  { %v902_v17 = vpop.xlane.xlu1 %901  ;;  %v917_v24 = vpop.xlane.xlu0 %916 }
 0x148   :  { %vm1127_vm8 = vcmp.eq.s32.totalorder %v895_v20, 0  ;;  %vm1126_vm7 = vcmp.eq.s32.totalorder %v882_v55, 0  ;;  %v905_v25 = vcvt.f32.s32 %v902_v17  ;;  %v919_v27 = vcvt.f32.s32 %v917_v24 }
 0x149   :  { %v1191_v43 = vsel %vm1127_vm8, 1, %v1604_v14  ;;  %v1190_v12 = vsel %vm1126_vm7, 1, %v1604_v14 }
 0x14a   :  { %v1482_v6 = vrot.slane %v1191_v43, %v1927_v8  ;;  %v1478_v48 = vrot.slane %v1190_v12, %v1931_v10  ;;  %v908_v29 = vadd.s32 %v907_v21, %v905_v25  ;;  %v920_v26 = vshll.u32 %v919_v27, 16 }
 0x14b   :  { %v915_v34 = vpop.xlane.xlu1 %914  ;;  %v930_v35 = vpop.xlane.xlu0 %929 }
 0x14c   :  { %v1483_v42 = vsel %vm1217_vm15, %v1482_v6, %v1478_v48  ;;  %vm1128_vm3 = vcmp.eq.s32.totalorder %v908_v29, 0  ;;  %v918_v38 = vcvt.f32.s32 %v915_v34  ;;  %v932_v39 = vcvt.f32.s32 %v930_v35 }
 0x14d   :  { %v1192_v1 = vsel %vm1128_vm3, 1, %v1604_v14 }
 0x14e   :  { %v1487_v41 = vrot.slane %v1192_v1, %v1939_v16  ;;  %v921_v5 = vadd.s32 %v920_v26, %v918_v38  ;;  %v933_v46 = vshll.u32 %v932_v39, 16 }
 0x14f   :  { %v761_v45 = vpop.xlane.xlu1 %760  ;;  %v943_v44 = vpop.xlane.xlu0 %942 }
 0x150   :  { %v1488_v8 = vsel %vm1224_vm2, %v1487_v41, %v1483_v42  ;;  %vm1129_vm4 = vcmp.eq.s32.totalorder %v921_v5, 0  ;;  %v763_v10 = vcvt.f32.s32 %v761_v45  ;;  %v945_v0 = vcvt.f32.s32 %v943_v44 }
 0x151   :  { %v1193_v3 = vsel %vm1129_vm4, 1, %v1604_v14 }
 0x152   :  { %v1492_v54 = vrot.slane %v1193_v3, %v1947_v22  ;;  %v764_v15 = vshll.u32 %v763_v10, 16  ;;  %v946_v23 = vshll.u32 %v945_v0, 16 }
 0x153   :  { %v956_v57 = vpop.xlane.xlu1 %955  ;;  %v928_v53 = vpop.xlane.xlu0 %927 }
 0x154   :  { %v1493_v49 = vsel %vm1231_vm6, %v1492_v54, %v1488_v8  ;;  %v765_v16 = vadd.s32 %v764_v15, %v762_v18  ;;  %v931_v59 = vcvt.f32.s32 %v928_v53  ;;  %v958_v42 = vcvt.f32.s32 %v956_v57 }
 0x156   :  { %vm1117_vm15 = vcmp.eq.s32.totalorder %v765_v16, 0  ;;  %v934_v60 = vadd.s32 %v933_v46, %v931_v59  ;;  %v959_v5 = vshll.u32 %v958_v42, 16 }
 0x157   :  { %v1181_v52 = vsel %vm1117_vm15, 1, %v1604_v14  ;;  %v941_v61 = vpop.xlane.xlu1 %940  ;;  %v774_v50 = vpop.xlane.xlu0 %773 }
 0x158   :  { %v1433_v63 = vrot.slane %v1181_v52, %v2000_v28  ;;  %vm1130_vm2 = vcmp.eq.s32.totalorder %v934_v60, 0  ;;  %v944_v22 = vcvt.f32.s32 %v941_v61  ;;  %v776_v26 = vcvt.f32.s32 %v774_v50 }
 0x159   :  { %v1194_v58 = vsel %vm1130_vm2, 1, %v1604_v14 }
 0x15a   :  { %v2387_v2 = vsel %vm1259_vm5, %v1433_v63, %v1429_v62  ;;  %v1497_v40 = vrot.slane %v1194_v58, %v1958_v31  ;;  %v947_v11 = vadd.s32 %v946_v23, %v944_v22  ;;  %v777_v39 = vshll.u32 %v776_v26, 16 }
 0x15b   :  { %v787_v51 = vpop.xlane.xlu1 %786  ;;  %v969_v19 = vpop.xlane.xlu0 %968 }
 0x15c   :  { %v1498_v20 = vsel %vm1238_vm9, %v1497_v40, %v1493_v49  ;;  %vm1131_vm6 = vcmp.eq.s32.totalorder %v947_v11, 0  ;;  %v971_v45 = vcvt.f32.s32 %v969_v19  ;;  %v789_v10 = vcvt.f32.s32 %v787_v51 }
 0x15d   :  { %v1195_v55 = vsel %vm1131_vm6, 1, %v1604_v14  ;;  %vm2495_vm6 = vcmask 720512  }
 0x15e   :  { %v1502_v21 = vrot.slane %v1195_v55, %v1961_v33  ;;  %v972_v46 = vshll.u32 %v971_v45, 16  ;;  %v790_v49 = vshll.u32 %v789_v10, 16 }
 0x15f   :  { %v982_v17 = vpop.xlane.xlu1 %981  ;;  %v954_v24 = vpop.xlane.xlu0 %953 }
 0x160   :  { %v2394_v25 = vsel %vm1245_vm11, %v1502_v21, %v1498_v20  ;;  %v957_v1 = vcvt.f32.s32 %v954_v24  ;;  %v984_v52 = vcvt.f32.s32 %v982_v17 }
 0x162   :  { %v960_v3 = vadd.s32 %v959_v5, %v957_v1  ;;  %v985_v55 = vshll.u32 %v984_v52, 16 }
 0x163   :  { %v800_v27 = vpop.xlane.xlu1 %799  ;;  %v772_v62 = vpop.xlane.xlu0 %771 }
 0x164   :  { %v775_v41 = vcvt.f32.s32 %v772_v62  ;;  %v802_v16 = vcvt.f32.s32 %v800_v27  ;;  %vm1132_vm9 = vcmp.eq.s32.totalorder %v960_v3, 0 }
 0x165   :  { %v1196_v63 = vsel %vm1132_vm9, 1, %v1604_v14  ;;  %vm1556_vm9 = vcmask 1042434  }
 0x166   :  { %v778_v18 = vadd.s32 %v777_v39, %v775_v41  ;;  %v803_v23 = vshll.u32 %v802_v16, 16  ;;  %v1507_v21 = vrot.slane %v1196_v63, %v1964_v37 }
 0x167   :  { %v995_v43 = vpop.xlane.xlu1 %994  ;;  %v967_v12 = vpop.xlane.xlu0 %966 }
 0x168   :  { %v970_v54 = vcvt.f32.s32 %v967_v12  ;;  %vm1118_vm11 = vcmp.eq.s32.totalorder %v778_v18, 0  ;;  %v997_v58 = vcvt.f32.s32 %v995_v43  ;;  %v1508_v1 = vsel %vm1252_vm14, %v1507_v21, %v2394_v25 }
 0x169   :  { %v1182_v22 = vsel %vm1118_vm11, 1, %v1604_v14 }
 0x16a   :  { %v973_v0 = vadd.s32 %v972_v46, %v970_v54  ;;  %v1438_v17 = vrot.slane %v1182_v22, %v2018_v7  ;;  %v998_v12 = vshll.u32 %v997_v58, 16 }
 0x16b   :  { %v813_v31 = vpop.xlane.xlu1 %812  ;;  %v785_v6 = vpop.xlane.xlu0 %784 }
 0x16c   :  { %v788_v15 = vcvt.f32.s32 %v785_v6  ;;  %vm1133_vm0 = vcmp.eq.s32.totalorder %v973_v0, 0  ;;  %v815_v40 = vcvt.f32.s32 %v813_v31  ;;  %v1439_v41 = vsel %vm1266_vm10, %v1438_v17, %v2387_v2 }
 0x16d   :  { %v1197_v6 = vsel %vm1133_vm0, 1, %v1604_v14 }
 0x16e   :  { %v791_v59 = vadd.s32 %v790_v49, %v788_v15  ;;  %v816_v31 = vshll.u32 %v815_v40, 16  ;;  %v1512_v5 = vrot.slane %v1197_v6, %v2000_v28 }
 0x16f   :  { %v2396_v48 = vpop.xlane.xlu1 %1007  ;;  %v980_v29 = vpop.xlane.xlu0 %979 }
 0x170   :  { %v983_v11 = vcvt.f32.s32 %v980_v29  ;;  %vm1119_vm8 = vcmp.eq.s32.totalorder %v791_v59, 0  ;;  %v1010_v43 = vcvt.f32.s32 %v2396_v48  ;;  %v2422_v46 = vsel %vm1259_vm5, %v1512_v5, %v1508_v1 }
 0x171   :  { %v1183_v29 = vsel %vm1119_vm8, 1, %v1604_v14 }
 0x172   :  { %v1011_v10 = vshll.u32 %v1010_v43, 16 }
 0x173   :  { %v826_v34 = vpop.xlane.xlu1 %825  ;;  %v798_v35 = vpop.xlane.xlu0 %797 }
 0x174   :  { %v801_v60 = vcvt.f32.s32 %v798_v35  ;;  %v828_v51 = vcvt.f32.s32 %v826_v34  ;;  %v986_v34 = vadd.s32 %v985_v55, %v983_v11 }
 0x176   :  { %v804_v19 = vadd.s32 %v803_v23, %v801_v60  ;;  %v829_v26 = vshll.u32 %v828_v51, 16  ;;  %vm1134_vm3 = vcmp.eq.s32.totalorder %v986_v34, 0 }
 0x177   :  { %v2398_v38 = vpop.xlane.xlu1 %1020  ;;  %v993_v33 = vpop.xlane.xlu0 %992  ;;  %v1198_v52 = vsel %vm1134_vm3, 1, %v1604_v14 }
 0x178   :  { %v996_v20 = vcvt.f32.s32 %v993_v33  ;;  %vm1120_vm7 = vcmp.eq.s32.totalorder %v804_v19, 0  ;;  %v1023_v54 = vcvt.f32.s32 %v2398_v38 }
 0x179   :  { %v1184_v18 = vsel %vm1120_vm7, 1, %v1604_v14 }
 0x17a   :  { %v999_v33 = vadd.s32 %v998_v12, %v996_v20 }
 0x17b   :  { %v839_v44 = vpop.xlane.xlu1 %838  ;;  %v811_v8 = vpop.xlane.xlu0 %810 }
 0x17c   :  { %v814_v24 = vcvt.f32.s32 %v811_v8  ;;  %v841_v42 = vcvt.f32.s32 %v839_v44  ;;  %v1443_v8 = vrot.slane %v1183_v29, %v2039_v4  ;;  %vm1135_vm14 = vcmp.eq.s32.totalorder %v999_v33, 0 }
 0x17e   :  { %v817_v39 = vadd.s32 %v816_v31, %v814_v24  ;;  %v842_v15 = vshll.u32 %v841_v42, 16  ;;  %v1444_v59 = vsel %vm1273_vm1, %v1443_v8, %v1439_v41  ;;  %v1517_v24 = vrot.slane %v1198_v52, %v2018_v7 }
 0x17f   :  { %v2400_v53 = vpop.xlane.xlu1 %1033  ;;  %v1006_v57 = vpop.xlane.xlu0 %1005 }
 0x180   :  { %v1009_v37 = vcvt.f32.s32 %v1006_v57  ;;  %v1036_v25 = vcvt.f32.s32 %v2400_v53  ;;  %vm1121_vm4 = vcmp.eq.s32.totalorder %v817_v39, 0  ;;  %v1448_v53 = vrot.slane %v1184_v18, %v2057_v32 }
 0x181   :  { %v1185_v63 = vsel %vm1121_vm4, 1, %v1604_v14  ;;  %vm2497_vm4 = vcmask 982912  }
 0x182   :  { %v1012_v2 = vadd.s32 %v1011_v10, %v1009_v37  ;;  %v1037_v23 = vshll.u32 %v1036_v25, 16  ;;  %v1453_v12 = vrot.slane %v1185_v63, %v2083_v9 }
 0x183   :  { %v2402_v61 = vpop.xlane.xlu1 %851  ;;  %v824_v50 = vpop.xlane.xlu0 %823 }
 0x184   :  { %v827_v35 = vcvt.f32.s32 %v824_v50  ;;  %v854_v28 = vcvt.f32.s32 %v2402_v61  ;;  %v1024_v50 = vshll.u32 %v1023_v54, 16  ;;  %v1199_v61 = vsel %vm1135_vm14, 1, %v1604_v14 }
 0x185   :  { %vm1136_vm5 = vcmp.eq.s32.totalorder %v1012_v2, 0  ;;  %vm2496_vm14 = vcmask 917312  }
 0x186   :  { %v830_v3 = vadd.s32 %v829_v26, %v827_v35  ;;  %v855_v22 = vshll.u32 %v854_v28, 16  ;;  %v1200_v29 = vsel %vm1136_vm5, 1, %v1604_v14 }
 0x187   :  { %v1047_v27 = vpop.xlane.xlu1 %1046  ;;  %v1019_v62 = vpop.xlane.xlu0 %1018  ;;  %v1527_v5 = vrot.slane %v1200_v29, %v2057_v32  ;;  %v1518_v32 = vsel %vm1266_vm10, %v1517_v24, %v2422_v46 }
 0x188   :  { %v1022_v57 = vcvt.f32.s32 %v1019_v62  ;;  %vm1122_vm15 = vcmp.eq.s32.totalorder %v830_v3, 0  ;;  %v1049_v60 = vcvt.f32.s32 %v1047_v27  ;;  %v1449_v27 = vsel %vm2495_vm6, %v1448_v53, %v1444_v59 }
 0x189   :  { %v1186_v58 = vsel %vm1122_vm15, 1, %v1604_v14  ;;  %v1522_v62 = vrot.slane %v1199_v61, %v2039_v4  ;;  %v1454_v33 = vsel %vm1287_vm13, %v1453_v12, %v1449_v27  ;;  %vm2498_vm15 = vmmov %vm2495_vm6  ;;  %vm1558_vm6 = vcmask 1043459  }
 0x18a   :  { %v1025_v40 = vadd.s32 %v1024_v50, %v1022_v57  ;;  %v1050_v20 = vshll.u32 %v1049_v60, 16  ;;  %v1458_v6 = vrot.slane %v1186_v58, %v2133_v13 }
 0x18b   :  { %v865_v48 = vpop.xlane.xlu1 %864  ;;  %v837_v45 = vpop.xlane.xlu0 %836 }
 0x18c   :  { %v840_v44 = vcvt.f32.s32 %v837_v45  ;;  %v867_v11 = vcvt.f32.s32 %v865_v48  ;;  %vm1137_vm11 = vcmp.eq.s32.totalorder %v1025_v40, 0  ;;  %v1459_v39 = vsel %vm1294_vm12, %v1458_v6, %v1454_v33 }
 0x18d   :  { %v1201_v48 = vsel %vm1137_vm11, 1, %v1604_v14  ;;  %vm2501_vm11 = vmmov %vm2497_vm4 }
 0x18e   :  { %v843_v49 = vadd.s32 %v842_v15, %v840_v44  ;;  %v868_v34 = vshll.u32 %v867_v11, 16  ;;  %v1532_v28 = vrot.slane %v1201_v48, %v2083_v9 }
 0x18f   :  { %v1060_v16 = vpop.xlane.xlu1 %1059  ;;  %v1032_v0 = vpop.xlane.xlu0 %1031 }
 0x190   :  { %v1035_v38 = vcvt.f32.s32 %v1032_v0  ;;  %vm1123_vm2 = vcmp.eq.s32.totalorder %v843_v49, 0  ;;  %v1062_v42 = vcvt.f32.s32 %v1060_v16 }
 0x191   :  { %v1187_v43 = vsel %vm1123_vm2, 1, %v1604_v14  ;;  %vm2499_vm2 = vcmask 1048512  }
 0x192   :  { %v1038_v55 = vadd.s32 %v1037_v23, %v1035_v38  ;;  %v1463_v37 = vrot.slane %v1187_v43, %v2168_v30  ;;  %v1063_v8 = vshll.u32 %v1062_v42, 16  ;;  %v1523_v38 = vsel %vm1273_vm1, %v1522_v62, %v1518_v32  ;;  %vm2500_vm1 = vmmov %vm2496_vm14 }
 0x193   :  { %v1045_v51 = vpop.xlane.xlu1 %1044  ;;  %v850_v19 = vpop.xlane.xlu0 %849  ;;  %v1528_v46 = vsel %vm2498_vm15, %v1527_v5, %v1523_v38 }
 0x194   :  { %v1048_v21 = vcvt.f32.s32 %v1045_v51  ;;  %v853_v17 = vcvt.f32.s32 %v850_v19  ;;  %vm1138_vm0 = vcmp.eq.s32.totalorder %v1038_v55, 0  ;;  %v1464_v57 = vsel %vm2496_vm14, %v1463_v37, %v1459_v39 }
 0x195   :  { %v1202_v10 = vsel %vm1138_vm0, 1, %v1604_v14  ;;  %v1533_v50 = vsel %vm1287_vm13, %v1532_v28, %v1528_v46  ;;  %vm2502_vm13 = vmmov %vm2499_vm2 }
 0x196   :  { %v1051_v35 = vadd.s32 %v1050_v20, %v1048_v21  ;;  %v856_v31 = vadd.s32 %v855_v22, %v853_v17  ;;  %v1537_v16 = vrot.slane %v1202_v10, %v2133_v13 }
 0x197   :  { %v863_v7 = vpop.xlane.xlu1 %862  ;;  %v1073_v26 = vpop.xlane.xlu0 %1072 }
 0x198   :  { %vm1139_vm8 = vcmp.eq.s32.totalorder %v1051_v35, 0  ;;  %vm1124_vm7 = vcmp.eq.s32.totalorder %v856_v31, 0  ;;  %v866_v4 = vcvt.f32.s32 %v863_v7  ;;  %v1075_v41 = vcvt.f32.s32 %v1073_v26 }
 0x199   :  { %v1188_v1 = vsel %vm1124_vm7, 1, %v1604_v14  ;;  %v1203_v3 = vsel %vm1139_vm8, 1, %v1604_v14  ;;  %v1538_v23 = vsel %vm1294_vm12, %v1537_v16, %v1533_v50 }
 0x19a   :  { %v869_v45 = vadd.s32 %v868_v34, %v866_v4  ;;  %v1468_v44 = vrot.slane %v1188_v1, %v2186_v56  ;;  %v1076_v15 = vshll.u32 %v1075_v41, 16  ;;  %v1542_v52 = vrot.slane %v1203_v3, %v2168_v30 }
 0x19b   :  { %v1071_v18 = vpop.xlane.xlu1 %1070  ;;  %v1058_v54 = vpop.xlane.xlu0 %1057 }
 0x19c   :  { %vm1125_vm3 = vcmp.eq.s32.totalorder %v869_v45, 0  ;;  %v1074_v25 = vcvt.f32.s32 %v1071_v18  ;;  %v1061_v2 = vcvt.f32.s32 %v1058_v54  ;;  %v1469_v53 = vsel %vm2497_vm4, %v1468_v44, %v1464_v57 }
 0x19d   :  { %v1189_v49 = vsel %vm1125_vm3, 1, %v1604_v14  ;;  %v1543_v58 = vsel %vm2500_vm1, %v1542_v52, %v1538_v23 }
 0x19e   :  { %v1473_v0 = vrot.slane %v1189_v49, %v2206_v36  ;;  %v1077_v59 = vadd.s32 %v1076_v15, %v1074_v25  ;;  %v1064_v60 = vadd.s32 %v1063_v8, %v1061_v2 }
 0x1a0   :  { %vm1141_vm10 = vcmp.eq.s32.totalorder %v1077_v59, 0  ;;  %vm1140_vm5 = vcmp.eq.s32.totalorder %v1064_v60, 0  ;;  %v1474_v9 = vsel %vm2499_vm2, %v1473_v0, %v1469_v53 }
 0x1a1   :  { %v1205_v13 = vsel %vm1141_vm10, 1, %v1604_v14  ;;  %v1204_v61 = vsel %vm1140_vm5, 1, %v1604_v14  ;;  %v1557_v63 = vsel %vm1556_vm9, %v1474_v9, %v2350_v47 }
 0x1a2   :  { %v1552_v30 = vrot.slane %v1205_v13, %v2206_v36  ;;  %v1547_v22 = vrot.slane %v1204_v61, %v2186_v56 }
 0x1a4   :  { %v1548_v40 = vsel %vm2501_vm11, %v1547_v22, %v1543_v58 }
 0x1a5   :  { %v1553_v11 = vsel %vm2502_vm13, %v1552_v30, %v1548_v40 }
 0x1a6   :  { %v1559_v14 = vsel %vm1558_vm6, %v1553_v11, %v1557_v63 }
 0x1a7   :  { %1560 = vst [vmem:[#allocation2] sm:$0xf] %v1559_v14 }
 0x1a8   :  { %1590 = shalt.err (!%p1587_p4)
}
 0x1a9   :  { %s1591_s26 = scalar_lea.hbm %s2486_s2, 64 }
 0x1aa   :  { %p1592_p5 = scmp.ne.s32.totalorder %s2486_s2, %s1591_s26  ;;  %p1595_p6 = scmp.lt.u32.totalorder %s1591_s26, %s2486_s2 }
 0x1ac   :  { %p1597_p7 = pnand %p1595_p6, %p1592_p5 }
 0x1ae   :  { %1600 = shalt.err (!%p1597_p7)
}
 0x1af   :  { %1570 = dma.vmem_to_hbm [thread:$0]  %s1568_s22, 64, %s2486_s2, [#allocation3]  }
 0x1b0   :  { %1601 = dma.done.wait [#allocation3], 64  }
 0x1b1   :  { %1602 = vsyncadd [#allocation3], 4294967232 }
 0x1b2   :  { %1574 = vsyncpa [#allocation3], 1 }

</bundles_post_ra>
